<compile_context>
chip_gen: v7x
topology: tpu7x:2x2x1
jax: 0.10.0
libtpu: 0.0.40
codegen_flags: <defaults>
</compile_context>

<pallas_src>
import functools

import jax
import jax.numpy as jnp
from jax.experimental import pallas as pl
from jax.experimental.pallas import tpu as pltpu


def _round_up(v, m):
    return ((v + m - 1) // m) * m


def linear_kernel(x_ref, w_ref, b_ref, o_ref):
    """out = x @ W.T + b, everything fully resident in VMEM.

    x_ref: (B, K)   f32 activations, unpadded (full-extent block)
    w_ref: (Ap, K)  bf16 weight in torch (A, K) layout, A padded to 8 sublanes
    b_ref: (1, Ap)  f32 bias
    o_ref: (B, Ap)  f32 output
    """
    x_bf = x_ref[...].astype(jnp.bfloat16)      # native MXU input dtype
    acc = jax.lax.dot_general(
        x_bf,
        w_ref[...],
        dimension_numbers=(((1,), (1,)), ((), ())),  # contract K (lane axis)
        preferred_element_type=jnp.float32,          # f32 accumulation
    )
    o_ref[...] = (acc + b_ref[...]).astype(o_ref.dtype)


def prepare_linear_q_params(w, b):
    """One-time parameter layouting (hoisted off the per-forward hot path).

    w: (A, K) float32 (torch nn.Linear weight layout), b: (A,) float32.
    Returns:
      w_p: (Ap, K) bfloat16, A padded up to 8 sublanes, K left unpadded.
      b_p: (1, Ap) float32 bias.
    Zero rows in the A padding produce zero outputs that are sliced away.
    """
    A, K = w.shape
    Ap = _round_up(max(A, 8), 8)
    w_p = jnp.zeros((Ap, K), jnp.bfloat16).at[:A, :].set(w.astype(jnp.bfloat16))
    b_p = jnp.zeros((1, Ap), jnp.float32).at[0, :A].set(b.astype(jnp.float32))
    return w_p, b_p


@functools.partial(jax.jit, static_argnames=("num_actions",))
def linear_q_forward(x, w_p, b_p, *, num_actions):
    """Forward of LinearQ.

    x:   (B, stack, 84, 84) float32 NCHW
    w_p: (Ap, K) bf16 pre-laid-out weight from prepare_linear_q_params
    b_p: (1, Ap) f32 pre-laid-out bias
    returns (B, num_actions) float32
    """
    B = x.shape[0]
    x_flat = x.reshape(B, -1).astype(jnp.float32)   # same as torch .view
    K = x_flat.shape[1]
    Ap, Kw = w_p.shape
    assert Kw == K, "weight layout does not match flattened input size"

    out_p = pl.pallas_call(
        linear_kernel,
        out_shape=jax.ShapeDtypeStruct((B, Ap), jnp.float32),
        grid=(1,),  # whole problem (~0.7 MB) fits in VMEM: single step
        in_specs=[
            pl.BlockSpec((B, K), lambda i: (0, 0)),    # full-extent, unpadded
            pl.BlockSpec((Ap, K), lambda i: (0, 0)),   # bf16 weight, A->8 only
            pl.BlockSpec((1, Ap), lambda i: (0, 0)),
        ],
        out_specs=pl.BlockSpec((B, Ap), lambda i: (0, 0)),
        compiler_params=pltpu.CompilerParams(
            dimension_semantics=("arbitrary",),
        ),
    )(x_flat, w_p, b_p)

    return out_p[:, :num_actions]


if __name__ == "__main__":
    # Module hyper-params (consistent with LinearQ: 84x84 stacked frames;
    # the 84x84 spatial size is baked into the module's input_size).
    stack = 4
    action_space = 4
    batch = 2
    input_size = 84 * 84 * stack

    key = jax.random.PRNGKey(0)
    kx, kw, kb = jax.random.split(key, 3)

    # Deterministic parameter init (uniform, like torch's default Linear bound).
    bound = 1.0 / (input_size ** 0.5)
    w = jax.random.uniform(kw, (action_space, input_size), jnp.float32,
                           minval=-bound, maxval=bound)
    b = jax.random.uniform(kb, (action_space,), jnp.float32,
                           minval=-bound, maxval=bound)

    # Input: NCHW stacked frames.
    x = jax.random.uniform(kx, (batch, stack, 84, 84), jnp.float32)

    # One-time parameter layouting (off the hot path), then the forward.
    w_p, b_p = prepare_linear_q_params(w, b)
    out = linear_q_forward(x, w_p, b_p, num_actions=action_space)
    out = jax.block_until_ready(out)

    # Reference check in plain JAX.  Tolerance accounts for the bf16 weight /
    # bf16 MXU inputs (matches TPU default matmul precision); f32 accumulation
    # keeps the error ~1e-3 over K=28224 terms.
    ref = x.reshape(batch, -1) @ w.T + b
    assert out.shape == (batch, action_space)
    assert jnp.allclose(out, ref, atol=1e-2, rtol=1e-2)

    print("KERNEL_OK")
</pallas_src>

<mosaic_0001>
module attributes {stable_mosaic.version = 11 : i64} {
  func.func @linear_kernel(%arg0: i32, %arg1: memref<2x28224xf32, #tpu.memory_space<vmem>>, %arg2: memref<8x28224xbf16, #tpu.memory_space<vmem>>, %arg3: memref<1x8xf32, #tpu.memory_space<vmem>>, %arg4: memref<2x8xf32, #tpu.memory_space<vmem>>) attributes {dimension_semantics = [#tpu.dimension_semantics<arbitrary>], iteration_bounds = array<i64: 1>, scalar_prefetch = 0 : i64, scratch_operands = 0 : i64, tpu.core_type = #tpu.core_type<tc>, window_params = [{pipeline_mode = #tpu.pipeline_mode<synchronous>, transform_indices = @transform_0, window_bounds = array<i64: 2, 28224>}, {pipeline_mode = #tpu.pipeline_mode<synchronous>, transform_indices = @transform_1, window_bounds = array<i64: 8, 28224>}, {pipeline_mode = #tpu.pipeline_mode<synchronous>, transform_indices = @transform_2, window_bounds = array<i64: 1, 8>}, {pipeline_mode = #tpu.pipeline_mode<synchronous>, transform_indices = @transform_3, window_bounds = array<i64: 2, 8>}]} {
    %c0 = arith.constant 0 : index
    %c0_0 = arith.constant 0 : index
    %0 = vector.load %arg1[%c0, %c0_0] : memref<2x28224xf32, #tpu.memory_space<vmem>>, vector<2x28224xf32>
    %1 = arith.truncf %0 : vector<2x28224xf32> to vector<2x28224xbf16>
    %c0_1 = arith.constant 0 : index
    %c0_2 = arith.constant 0 : index
    %2 = vector.load %arg2[%c0_1, %c0_2] : memref<8x28224xbf16, #tpu.memory_space<vmem>>, vector<8x28224xbf16>
    %cst = arith.constant dense<0.000000e+00> : vector<2x8xf32>
    %3 = tpu.matmul %1, %2, %cst {dimension_numbers = #tpu.dot_dimension_numbers<[1], [1], [0], [0], [0, 0, 1, 0], [], []>} : vector<2x28224xbf16>, vector<8x28224xbf16>, vector<2x8xf32> -> vector<2x8xf32>
    %c0_3 = arith.constant 0 : index
    %c0_4 = arith.constant 0 : index
    %4 = vector.load %arg3[%c0_3, %c0_4] : memref<1x8xf32, #tpu.memory_space<vmem>>, vector<1x8xf32>
    %5 = vector.broadcast %4 : vector<1x8xf32> to vector<2x8xf32>
    %6 = arith.addf %3, %5 : vector<2x8xf32>
    %c0_5 = arith.constant 0 : index
    %c0_6 = arith.constant 0 : index
    %7 = vector.load %arg4[%c0_5, %c0_6] : memref<2x8xf32, #tpu.memory_space<vmem>>, vector<2x8xf32>
    tpu.vector_store %arg4[%c0_5, %c0_6], %6 {strides = array<i32>} : memref<2x8xf32, #tpu.memory_space<vmem>>, vector<2x8xf32>,
    return
  }
  func.func @transform_0(%arg0: i32) -> (i32, i32) {
    %c0_i32 = arith.constant 0 : i32
    %c0_i32_0 = arith.constant 0 : i32
    %c0_i32_1 = arith.constant 0 : i32
    return %c0_i32, %c0_i32_0 : i32, i32
  }
  func.func @transform_1(%arg0: i32) -> (i32, i32) {
    %c0_i32 = arith.constant 0 : i32
    %c0_i32_0 = arith.constant 0 : i32
    %c0_i32_1 = arith.constant 0 : i32
    return %c0_i32, %c0_i32_0 : i32, i32
  }
  func.func @transform_2(%arg0: i32) -> (i32, i32) {
    %c0_i32 = arith.constant 0 : i32
    %c0_i32_0 = arith.constant 0 : i32
    %c0_i32_1 = arith.constant 0 : i32
    return %c0_i32, %c0_i32_0 : i32, i32
  }
  func.func @transform_3(%arg0: i32) -> (i32, i32) {
    %c0_i32 = arith.constant 0 : i32
    %c0_i32_0 = arith.constant 0 : i32
    %c0_i32_1 = arith.constant 0 : i32
    return %c0_i32, %c0_i32_0 : i32, i32
  }
}

</mosaic_0001>

<bundles_post_ra>
// kernel: linear_q_forward.1
= control target key start
LH: loop header
LB: loop body
LE: loop exit
PB: predicated region body
PF: predicated region fallthrough
CT: control target
= control target key end

     0   :  { %v132_v2 = vlaneseq  ;;  %v7842_v10 = vmov 1983009808   ;;  %s8496_s0 = inlined_call_operand.vmem [shape: f32[2,28224], index: 0, kind: input, shape index: {}]   ;;  %s8497_s1 = inlined_call_operand.vmem [shape: bf16[8,28224], index: 1, kind: input, shape index: {}]   ;;  %s8498_s2 = inlined_call_operand.vmem [shape: f32[1,8], index: 2, kind: input, shape index: {}]   ;;  %s8499_s3 = inlined_call_operand.hbm [shape: f32[2,8], index: 3, kind: output, shape index: {}]  }
   0x1   :  { %v1567_v0 = vld [vmem:[%s8497_s1 + $0x1b8] sm:$0xff]  ;;  %v1512_v1 = vld [vmem:[%s8497_s1] sm:$0xff]  ;;  %v1513_v9 = vld [vmem:[%s8497_s1 + $0x8] sm:$0xff]  ;;  %v130_v11 = vunpack.c.l.s4 %v7842_v10 }
   0x2   :  { %v6979_v3 = vcombine.high %v1567_v0, %v1567_v0  ;;  %v6869_v4 = vcombine.high %v1512_v1, %v1512_v1  ;;  %v6978_v5 = vcombine.low %v1567_v0, %v1567_v0  ;;  %v6868_v6 = vcombine.low %v1512_v1, %v1512_v1  ;;  %v43_v7 = vld [vmem:[%s8496_s0 + $0xd8] sm:$0xff]  ;;  %v1568_v8 = vld [vmem:[%s8497_s1 + $0x1c0] sm:$0xff]  ;;  %v1569_v31 = vld [vmem:[%s8497_s1 + $0x1c8] sm:$0xff] }
   0x3   :  { %v133_v12 = vshrl.u32 %v132_v2, 7  ;;  %v16_v13 = vld [vmem:[%s8496_s0] sm:$0xff]  ;;  %v6981_v14 = vcombine.high %v1568_v8, %v1568_v8  ;;  %v131_v16 = vunpack.c.0.s8 %v130_v11  ;;  %v587_v17 = vcombine.high %v43_v7, %v43_v7  ;;  %v1514_v32 = vld [vmem:[%s8497_s1 + $0x10] sm:$0xff] }
   0x4   :  { %4610 = vmatprep.subr.bf16.mxu0 %v6979_v3  ;;  %2410 = vmatprep.subr.bf16.mxu1 %v6869_v4  ;;  %v128_v15 = vcombine.high %v16_v13, %v16_v13  ;;  %v6871_v18 = vcombine.high %v1513_v9, %v1513_v9  ;;  %v44_v19 = vld [vmem:[%s8496_s0 + $0xe0] sm:$0xff]  ;;  %v6980_v35 = vcombine.low %v1568_v8, %v1568_v8 }
   0x5   :  { %4611 = vmatpush1.bf16.xpose.msra.mxu0 %v6978_v5  ;;  %2411 = vmatpush1.bf16.xpose.msra.mxu1 %v6868_v6  ;;  %v7887_v20 = vsub.s32 %v131_v16, %v133_v12  ;;  %v6870_v36 = vcombine.low %v1513_v9, %v1513_v9  ;;  %v604_v39 = vcombine.high %v44_v19, %v44_v19 }
   0x6   :  { %4650 = vmatprep.subr.bf16.mxu0 %v6981_v14  ;;  %2450 = vmatprep.subr.bf16.mxu1 %v6871_v18 }
   0x7   :  { %v135_v21 = vrot.slane %v16_v13, %v7887_v20  ;;  %v601_v22 = vrot.slane %v587_v17, %v7887_v20  ;;  %v142_v23 = vrot.slane %v128_v15, %v7887_v20  ;;  %v611_v24 = vrot.slane %v44_v19, %v7887_v20 }
   0x9   :  { %v143_v25 = vcombine.high %v135_v21, %v135_v21  ;;  %v603_v26 = vcombine.high %v601_v22, %v601_v22  ;;  %v1291_v27 = vpack.c.bf16 %v135_v21, %v135_v21  ;;  %v1401_v28 = vpack.c.bf16 %v601_v22, %v601_v22 }
   0xa   :  { %v144_v29 = vcombine.high %v142_v23, %v142_v23  ;;  %v619_v30 = vcombine.high %v611_v24, %v611_v24 }
   0xb   :  { %v1292_v33 = vpack.c.bf16 %v143_v25, %v143_v25  ;;  %v1402_v34 = vpack.c.bf16 %v603_v26, %v603_v26 }
   0xc   :  { %v1294_v37 = vpack.c.bf16 %v144_v29, %v144_v29  ;;  %v1404_v38 = vpack.c.bf16 %v619_v30, %v619_v30 }
   0xd   :  { %8 = vsyncpa [#allocation3], 0  ;;  %2442 = vmatprep.mubr.bf16.mxu1 %v1292_v33  ;;  %4642 = vmatprep.mubr.bf16.mxu0 %v1402_v34  ;;  %v6983_v40 = vcombine.high %v1569_v31, %v1569_v31  ;;  %v6873_v41 = vcombine.high %v1514_v32, %v1514_v32  ;;  %v17_v42 = vld [vmem:[%s8496_s0 + $0x8] sm:$0xff]  ;;  %v618_v44 = vrot.slane %v604_v39, %v7887_v20  ;;  %v1570_v49 = vld [vmem:[%s8497_s1 + $0x1d0] sm:$0xff]  ;;  %vm2403_vm0 = vcmask 523264   ;;  %s7845_s25 = smov [#allocation2]  }
   0xe   :  { %2443 = vmatmul.mubr.bf16.vlgmr.msra.gmra.mrb[0].mxu1 %v1291_v27  ;;  %4643 = vmatmul.mubr.bf16.vlgmr.msra.gmra.mrb[0].mxu0 %v1401_v28  ;;  %v152_v43 = vrot.slane %v17_v42, %v7887_v20  ;;  %v1293_v47 = vpack.c.bf16 %v142_v23, %v142_v23  ;;  %v1403_v48 = vpack.c.bf16 %v611_v24, %v611_v24  ;;  %v1515_v50 = vld [vmem:[%s8497_s1 + $0x18] sm:$0xff]  ;;  %v45_v58 = vld [vmem:[%s8496_s0 + $0xe8] sm:$0xff]  ;;  %v1516_v2 = vld [vmem:[%s8497_s1 + $0x20] sm:$0xff]  ;;  %vm7844_vm1 = vmmov 0   ;;  %s6858_s26 = sshll.u32 %s7845_s25, 4  ;;  %s6859_s26 = int_to_ptr.vmem [resolvable:$true] %s6858_s26 }
   0xf   :  { %4651 = vmatpush1.bf16.xpose.msra.mxu0 %v6980_v35  ;;  %2451 = vmatpush1.bf16.xpose.msra.mxu1 %v6870_v36  ;;  %v620_v46 = vcombine.high %v618_v44, %v618_v44  ;;  %v6982_v51 = vcombine.low %v1569_v31, %v1569_v31  ;;  %v6872_v52 = vcombine.low %v1514_v32, %v1514_v32  ;;  %v1571_v1 = vld [vmem:[%s8497_s1 + $0x1d8] sm:$0xff]  ;;  %v18_v10 = vld [vmem:[%s8496_s0 + $0x10] sm:$0xff]  ;;  %v1572_v17 = vld [vmem:[%s8497_s1 + $0x1e0] sm:$0xff]  ;;  %vm6850_vm2 = vcmask 58368   ;;  %p7823_p1 = scmp.lt.s32.totalorder %s6859_s26, %s6859_s26 }
  0x10   :  { %2482 = vmatprep.mubr.bf16.mxu1 %v1294_v37  ;;  %4682 = vmatprep.mubr.bf16.mxu0 %v1404_v38  ;;  %v160_v45 = vcombine.high %v152_v43, %v152_v43  ;;  %v145_v55 = vcombine.high %v17_v42, %v17_v42  ;;  %v6985_v56 = vcombine.high %v1570_v49, %v1570_v49  ;;  %v1517_v18 = vld [vmem:[%s8497_s1 + $0x28] sm:$0xff]  ;;  %v46_v27 = vld [vmem:[%s8496_s0 + $0xf0] sm:$0xff] }
  0x11   :  { %4690 = vmatprep.subr.bf16.mxu0 %v6983_v40  ;;  %2490 = vmatprep.subr.bf16.mxu1 %v6873_v41  ;;  %v1406_v54 = vpack.c.bf16 %v620_v46, %v620_v46  ;;  %v6875_v57 = vcombine.high %v1515_v50, %v1515_v50  ;;  %v628_v60 = vrot.slane %v45_v58, %v7887_v20  ;;  %v1573_v34 = vld [vmem:[%s8497_s1 + $0x1e8] sm:$0xff]  ;;  %v1518_v35 = vld [vmem:[%s8497_s1 + $0x30] sm:$0xff] }
  0x12   :  { %v1296_v53 = vpack.c.bf16 %v160_v45, %v160_v45  ;;  %v159_v59 = vrot.slane %v145_v55, %v7887_v20  ;;  %v1295_v63 = vpack.c.bf16 %v152_v43, %v152_v43  ;;  %v1405_v0 = vpack.c.bf16 %v618_v44, %v618_v44  ;;  %v19_v43 = vld [vmem:[%s8496_s0 + $0x18] sm:$0xff] }
  0x13   :  { %v636_v62 = vcombine.high %v628_v60, %v628_v60  ;;  %v6984_v3 = vcombine.low %v1570_v49, %v1570_v49  ;;  %v6874_v4 = vcombine.low %v1515_v50, %v1515_v50  ;;  %v621_v7 = vcombine.high %v45_v58, %v45_v58  ;;  %v1574_v50 = vld [vmem:[%s8497_s1 + $0x1f0] sm:$0xff] }
  0x14   :  { %v161_v61 = vcombine.high %v159_v59, %v159_v59  ;;  %v6987_v8 = vcombine.high %v1571_v1, %v1571_v1  ;;  %v6877_v9 = vcombine.high %v1516_v2, %v1516_v2  ;;  %v169_v11 = vrot.slane %v18_v10, %v7887_v20 }
  0x15   :  { %v1408_v6 = vpack.c.bf16 %v636_v62, %v636_v62  ;;  %v635_v12 = vrot.slane %v621_v7, %v7887_v20  ;;  %v1297_v15 = vpack.c.bf16 %v159_v59, %v159_v59  ;;  %v1407_v16 = vpack.c.bf16 %v628_v60, %v628_v60  ;;  %v47_v59 = vld [vmem:[%s8496_s0 + $0xf8] sm:$0xff] }
  0x16   :  { %v1298_v5 = vpack.c.bf16 %v161_v61, %v161_v61  ;;  %v177_v13 = vcombine.high %v169_v11, %v169_v11  ;;  %v6986_v19 = vcombine.low %v1571_v1, %v1571_v1  ;;  %v6876_v21 = vcombine.low %v1516_v2, %v1516_v2  ;;  %v1575_v2 = vld [vmem:[%s8497_s1 + $0x1f8] sm:$0xff] }
  0x17   :  { %v637_v14 = vcombine.high %v635_v12, %v635_v12  ;;  %v162_v24 = vcombine.high %v18_v10, %v18_v10  ;;  %v6989_v25 = vcombine.high %v1572_v17, %v1572_v17  ;;  %v6879_v26 = vcombine.high %v1517_v18, %v1517_v18 }
  0x18   :  { %v1300_v22 = vpack.c.bf16 %v177_v13, %v177_v13  ;;  %v645_v29 = vrot.slane %v46_v27, %v7887_v20  ;;  %v1299_v32 = vpack.c.bf16 %v169_v11, %v169_v11  ;;  %v1409_v33 = vpack.c.bf16 %v635_v12, %v635_v12  ;;  %v20_v11 = vld [vmem:[%s8496_s0 + $0x20] sm:$0xff] }
  0x19   :  { %v1410_v23 = vpack.c.bf16 %v637_v14, %v637_v14  ;;  %v176_v28 = vrot.slane %v162_v24, %v7887_v20  ;;  %v6988_v36 = vcombine.low %v1572_v17, %v1572_v17  ;;  %v6878_v37 = vcombine.low %v1517_v18, %v1517_v18  ;;  %v1576_v18 = vld [vmem:[%s8497_s1 + $0x200] sm:$0xff] }
  0x1a   :  { %2483 = vmatmul.mubr.bf16.vlgmr.msra.gmra.mrb[0].mxu1 %v1293_v47  ;;  %4683 = vmatmul.mubr.bf16.vlgmr.msra.gmra.mrb[0].mxu0 %v1403_v48  ;;  %v653_v31 = vcombine.high %v645_v29, %v645_v29  ;;  %v638_v40 = vcombine.high %v46_v27, %v46_v27  ;;  %v6991_v41 = vcombine.high %v1573_v34, %v1573_v34 }
  0x1b   :  { %4691 = vmatpush1.bf16.xpose.msra.mxu0 %v6982_v51  ;;  %2491 = vmatpush1.bf16.xpose.msra.mxu1 %v6872_v52  ;;  %v178_v30 = vcombine.high %v176_v28, %v176_v28  ;;  %v6881_v42 = vcombine.high %v1518_v35, %v1518_v35  ;;  %v186_v44 = vrot.slane %v19_v43, %v7887_v20  ;;  %v1519_v51 = vld [vmem:[%s8497_s1 + $0x38] sm:$0xff] }
  0x1c   :  { %2522 = vmatprep.mubr.bf16.mxu1 %v1296_v53  ;;  %4722 = vmatprep.mubr.bf16.mxu0 %v1406_v54  ;;  %v1412_v39 = vpack.c.bf16 %v653_v31, %v653_v31  ;;  %v652_v45 = vrot.slane %v638_v40, %v7887_v20  ;;  %v1301_v48 = vpack.c.bf16 %v176_v28, %v176_v28  ;;  %v48_v28 = vld [vmem:[%s8496_s0 + $0x100] sm:$0xff] }
  0x1d   :  { %4730 = vmatprep.subr.bf16.mxu0 %v6985_v56  ;;  %2530 = vmatprep.subr.bf16.mxu1 %v6875_v57  ;;  %v1302_v38 = vpack.c.bf16 %v178_v30, %v178_v30  ;;  %v194_v46 = vcombine.high %v186_v44, %v186_v44  ;;  %v1411_v49 = vpack.c.bf16 %v645_v29, %v645_v29 }
  0x1e   :  { %v654_v47 = vcombine.high %v652_v45, %v652_v45  ;;  %v6990_v52 = vcombine.low %v1573_v34, %v1573_v34  ;;  %v6880_v53 = vcombine.low %v1518_v35, %v1518_v35  ;;  %v179_v56 = vcombine.high %v19_v43, %v19_v43  ;;  %v1577_v35 = vld [vmem:[%s8497_s1 + $0x208] sm:$0xff] }
  0x1f   :  { %v1304_v54 = vpack.c.bf16 %v194_v46, %v194_v46  ;;  %v6993_v57 = vcombine.high %v1574_v50, %v1574_v50  ;;  %v6883_v58 = vcombine.high %v1519_v51, %v1519_v51  ;;  %v662_v61 = vrot.slane %v47_v59, %v7887_v20 }
  0x20   :  { %v1414_v55 = vpack.c.bf16 %v654_v47, %v654_v47  ;;  %v193_v60 = vrot.slane %v179_v56, %v7887_v20  ;;  %v1413_v1 = vpack.c.bf16 %v652_v45, %v652_v45  ;;  %v203_v12 = vrot.slane %v20_v11, %v7887_v20 }
  0x21   :  { %v1415_v17 = vpack.c.bf16 %v662_v61, %v662_v61  ;;  %v679_v30 = vrot.slane %v48_v28, %v7887_v20 }
  0x22   :  { %v195_v62 = vcombine.high %v193_v60, %v193_v60  ;;  %v211_v14 = vcombine.high %v203_v12, %v203_v12 }
  0x26   :  { %2523 = vmatmul.mubr.bf16.vlgmr.msra.gmra.mrb[0].mxu1 %v1295_v63  ;;  %4723 = vmatmul.mubr.bf16.vlgmr.msra.gmra.mrb[0].mxu0 %v1405_v0  ;;  %v670_v63 = vcombine.high %v662_v61, %v662_v61  ;;  %v1303_v0 = vpack.c.bf16 %v186_v44, %v186_v44  ;;  %v21_v44 = vld [vmem:[%s8496_s0 + $0x28] sm:$0xff] }
  0x27   :  { %4731 = vmatpush1.bf16.xpose.msra.mxu0 %v6984_v3  ;;  %2531 = vmatpush1.bf16.xpose.msra.mxu1 %v6874_v4  ;;  %v1520_v3 = vld [vmem:[%s8497_s1 + $0x40] sm:$0xff]  ;;  %v6992_v4 = vcombine.low %v1574_v50, %v1574_v50  ;;  %v220_v45 = vrot.slane %v21_v44, %v7887_v20  ;;  %v1419_v50 = vpack.c.bf16 %v679_v30, %v679_v30 }
  0x28   :  { %2562 = vmatprep.mubr.bf16.mxu1 %v1298_v5  ;;  %4762 = vmatprep.mubr.bf16.mxu0 %v1408_v6  ;;  %v6882_v5 = vcombine.low %v1519_v51, %v1519_v51  ;;  %v1306_v6 = vpack.c.bf16 %v195_v62, %v195_v62  ;;  %v1416_v7 = vpack.c.bf16 %v670_v63, %v670_v63  ;;  %v1578_v51 = vld [vmem:[%s8497_s1 + $0x210] sm:$0xff] }
  0x29   :  { %4770 = vmatprep.subr.bf16.mxu0 %v6987_v8  ;;  %2570 = vmatprep.subr.bf16.mxu1 %v6877_v9  ;;  %v655_v8 = vcombine.high %v47_v59, %v47_v59  ;;  %v6995_v9 = vcombine.high %v1575_v2, %v1575_v2  ;;  %v6885_v10 = vcombine.high %v1520_v3, %v1520_v3 }
  0x2a   :  { %v228_v47 = vcombine.high %v220_v45, %v220_v45 }
  0x2b   :  { %v669_v13 = vrot.slane %v655_v8, %v7887_v20 }
  0x2d   :  { %v1417_v34 = vpack.c.bf16 %v669_v13, %v669_v13 }
  0x32   :  { %2563 = vmatmul.mubr.bf16.vlgmr.msra.gmra.mrb[0].mxu1 %v1297_v15  ;;  %4763 = vmatmul.mubr.bf16.vlgmr.msra.gmra.mrb[0].mxu0 %v1407_v16  ;;  %v671_v15 = vcombine.high %v669_v13, %v669_v13  ;;  %v1305_v16 = vpack.c.bf16 %v193_v60, %v193_v60  ;;  %v49_v60 = vld [vmem:[%s8496_s0 + $0x108] sm:$0xff] }
  0x33   :  { %4771 = vmatpush1.bf16.xpose.msra.mxu0 %v6986_v19  ;;  %2571 = vmatpush1.bf16.xpose.msra.mxu1 %v6876_v21  ;;  %v1521_v19 = vld [vmem:[%s8497_s1 + $0x48] sm:$0xff]  ;;  %v6994_v21 = vcombine.low %v1575_v2, %v1575_v2  ;;  %v696_v62 = vrot.slane %v49_v60, %v7887_v20 }
  0x34   :  { %2602 = vmatprep.mubr.bf16.mxu1 %v1300_v22  ;;  %4802 = vmatprep.mubr.bf16.mxu0 %v1410_v23  ;;  %v6884_v22 = vcombine.low %v1520_v3, %v1520_v3  ;;  %v1308_v23 = vpack.c.bf16 %v211_v14, %v211_v14  ;;  %v1418_v24 = vpack.c.bf16 %v671_v15, %v671_v15  ;;  %v1579_v3 = vld [vmem:[%s8497_s1 + $0x218] sm:$0xff] }
  0x35   :  { %4810 = vmatprep.subr.bf16.mxu0 %v6989_v25  ;;  %2610 = vmatprep.subr.bf16.mxu1 %v6879_v26  ;;  %v196_v25 = vcombine.high %v20_v11, %v20_v11  ;;  %v6997_v26 = vcombine.high %v1576_v18, %v1576_v18  ;;  %v6887_v27 = vcombine.high %v1521_v19, %v1521_v19 }
  0x37   :  { %v210_v29 = vrot.slane %v196_v25, %v7887_v20 }
  0x39   :  { %v212_v31 = vcombine.high %v210_v29, %v210_v29 }
  0x3e   :  { %2603 = vmatmul.mubr.bf16.vlgmr.msra.gmra.mrb[0].mxu1 %v1299_v32  ;;  %4803 = vmatmul.mubr.bf16.vlgmr.msra.gmra.mrb[0].mxu0 %v1409_v33  ;;  %v687_v32 = vcombine.high %v679_v30, %v679_v30  ;;  %v1307_v33 = vpack.c.bf16 %v203_v12, %v203_v12  ;;  %v22_v12 = vld [vmem:[%s8496_s0 + $0x30] sm:$0xff] }
  0x3f   :  { %4811 = vmatpush1.bf16.xpose.msra.mxu0 %v6988_v36  ;;  %2611 = vmatpush1.bf16.xpose.msra.mxu1 %v6878_v37  ;;  %v1522_v36 = vld [vmem:[%s8497_s1 + $0x50] sm:$0xff]  ;;  %v6996_v37 = vcombine.low %v1576_v18, %v1576_v18  ;;  %v237_v13 = vrot.slane %v22_v12, %v7887_v20  ;;  %v1423_v18 = vpack.c.bf16 %v696_v62, %v696_v62 }
  0x40   :  { %2642 = vmatprep.mubr.bf16.mxu1 %v1302_v38  ;;  %4842 = vmatprep.mubr.bf16.mxu0 %v1412_v39  ;;  %v6886_v38 = vcombine.low %v1521_v19, %v1521_v19  ;;  %v1310_v39 = vpack.c.bf16 %v212_v31, %v212_v31  ;;  %v1420_v40 = vpack.c.bf16 %v687_v32, %v687_v32  ;;  %v1580_v19 = vld [vmem:[%s8497_s1 + $0x220] sm:$0xff] }
  0x41   :  { %4850 = vmatprep.subr.bf16.mxu0 %v6991_v41  ;;  %2650 = vmatprep.subr.bf16.mxu1 %v6881_v42  ;;  %v672_v41 = vcombine.high %v48_v28, %v48_v28  ;;  %v6999_v42 = vcombine.high %v1577_v35, %v1577_v35  ;;  %v6889_v43 = vcombine.high %v1522_v36, %v1522_v36 }
  0x42   :  { %v245_v15 = vcombine.high %v237_v13, %v237_v13 }
  0x43   :  { %v686_v46 = vrot.slane %v672_v41, %v7887_v20 }
  0x45   :  { %v1421_v2 = vpack.c.bf16 %v686_v46, %v686_v46 }
  0x4a   :  { %2643 = vmatmul.mubr.bf16.vlgmr.msra.gmra.mrb[0].mxu1 %v1301_v48  ;;  %4843 = vmatmul.mubr.bf16.vlgmr.msra.gmra.mrb[0].mxu0 %v1411_v49  ;;  %v688_v48 = vcombine.high %v686_v46, %v686_v46  ;;  %v1309_v49 = vpack.c.bf16 %v210_v29, %v210_v29  ;;  %v50_v29 = vld [vmem:[%s8496_s0 + $0x110] sm:$0xff] }
  0x4b   :  { %4851 = vmatpush1.bf16.xpose.msra.mxu0 %v6990_v52  ;;  %2651 = vmatpush1.bf16.xpose.msra.mxu1 %v6880_v53  ;;  %v1523_v52 = vld [vmem:[%s8497_s1 + $0x58] sm:$0xff]  ;;  %v6998_v53 = vcombine.low %v1577_v35, %v1577_v35  ;;  %v713_v31 = vrot.slane %v50_v29, %v7887_v20 }
  0x4c   :  { %2682 = vmatprep.mubr.bf16.mxu1 %v1304_v54  ;;  %4882 = vmatprep.mubr.bf16.mxu0 %v1414_v55  ;;  %v6888_v54 = vcombine.low %v1522_v36, %v1522_v36  ;;  %v1312_v55 = vpack.c.bf16 %v228_v47, %v228_v47  ;;  %v1422_v56 = vpack.c.bf16 %v688_v48, %v688_v48  ;;  %v1581_v36 = vld [vmem:[%s8497_s1 + $0x228] sm:$0xff] }
  0x4d   :  { %4890 = vmatprep.subr.bf16.mxu0 %v6993_v57  ;;  %2690 = vmatprep.subr.bf16.mxu1 %v6883_v58  ;;  %v213_v57 = vcombine.high %v21_v44, %v21_v44  ;;  %v7001_v58 = vcombine.high %v1578_v51, %v1578_v51  ;;  %v6891_v59 = vcombine.high %v1523_v52, %v1523_v52 }
  0x4f   :  { %v227_v61 = vrot.slane %v213_v57, %v7887_v20 }
  0x51   :  { %v229_v63 = vcombine.high %v227_v61, %v227_v61 }
  0x56   :  { %2683 = vmatmul.mubr.bf16.vlgmr.msra.gmra.mrb[0].mxu1 %v1303_v0  ;;  %4883 = vmatmul.mubr.bf16.vlgmr.msra.gmra.mrb[0].mxu0 %v1413_v1  ;;  %v704_v0 = vcombine.high %v696_v62, %v696_v62  ;;  %v1311_v1 = vpack.c.bf16 %v220_v45, %v220_v45  ;;  %v23_v45 = vld [vmem:[%s8496_s0 + $0x38] sm:$0xff] }
  0x57   :  { %4891 = vmatpush1.bf16.xpose.msra.mxu0 %v6992_v4  ;;  %2691 = vmatpush1.bf16.xpose.msra.mxu1 %v6882_v5  ;;  %v1524_v4 = vld [vmem:[%s8497_s1 + $0x60] sm:$0xff]  ;;  %v7000_v5 = vcombine.low %v1578_v51, %v1578_v51  ;;  %v254_v46 = vrot.slane %v23_v45, %v7887_v20  ;;  %v1427_v51 = vpack.c.bf16 %v713_v31, %v713_v31 }
  0x58   :  { %2722 = vmatprep.mubr.bf16.mxu1 %v1306_v6  ;;  %4922 = vmatprep.mubr.bf16.mxu0 %v1416_v7  ;;  %v6890_v6 = vcombine.low %v1523_v52, %v1523_v52  ;;  %v1314_v7 = vpack.c.bf16 %v229_v63, %v229_v63  ;;  %v1424_v8 = vpack.c.bf16 %v704_v0, %v704_v0  ;;  %v1582_v52 = vld [vmem:[%s8497_s1 + $0x230] sm:$0xff] }
  0x59   :  { %4930 = vmatprep.subr.bf16.mxu0 %v6995_v9  ;;  %2730 = vmatprep.subr.bf16.mxu1 %v6885_v10  ;;  %v689_v9 = vcombine.high %v49_v60, %v49_v60  ;;  %v7003_v10 = vcombine.high %v1579_v3, %v1579_v3  ;;  %v6893_v11 = vcombine.high %v1524_v4, %v1524_v4 }
  0x5a   :  { %v262_v48 = vcombine.high %v254_v46, %v254_v46 }
  0x5b   :  { %v703_v14 = vrot.slane %v689_v9, %v7887_v20 }
  0x5d   :  { %v1425_v35 = vpack.c.bf16 %v703_v14, %v703_v14 }
  0x62   :  { %2723 = vmatmul.mubr.bf16.vlgmr.msra.gmra.mrb[0].mxu1 %v1305_v16  ;;  %4923 = vmatmul.mubr.bf16.vlgmr.msra.gmra.mrb[0].mxu0 %v1415_v17  ;;  %v705_v16 = vcombine.high %v703_v14, %v703_v14  ;;  %v1313_v17 = vpack.c.bf16 %v227_v61, %v227_v61  ;;  %v51_v61 = vld [vmem:[%s8496_s0 + $0x118] sm:$0xff] }
  0x63   :  { %4931 = vmatpush1.bf16.xpose.msra.mxu0 %v6994_v21  ;;  %2731 = vmatpush1.bf16.xpose.msra.mxu1 %v6884_v22  ;;  %v1525_v21 = vld [vmem:[%s8497_s1 + $0x68] sm:$0xff]  ;;  %v7002_v22 = vcombine.low %v1579_v3, %v1579_v3  ;;  %v730_v63 = vrot.slane %v51_v61, %v7887_v20 }
  0x64   :  { %2762 = vmatprep.mubr.bf16.mxu1 %v1308_v23  ;;  %4962 = vmatprep.mubr.bf16.mxu0 %v1418_v24  ;;  %v6892_v23 = vcombine.low %v1524_v4, %v1524_v4  ;;  %v1316_v24 = vpack.c.bf16 %v245_v15, %v245_v15  ;;  %v1426_v25 = vpack.c.bf16 %v705_v16, %v705_v16  ;;  %v1583_v4 = vld [vmem:[%s8497_s1 + $0x238] sm:$0xff] }
  0x65   :  { %4970 = vmatprep.subr.bf16.mxu0 %v6997_v26  ;;  %2770 = vmatprep.subr.bf16.mxu1 %v6887_v27  ;;  %v230_v26 = vcombine.high %v22_v12, %v22_v12  ;;  %v7005_v27 = vcombine.high %v1580_v19, %v1580_v19  ;;  %v6895_v28 = vcombine.high %v1525_v21, %v1525_v21 }
  0x67   :  { %v244_v30 = vrot.slane %v230_v26, %v7887_v20 }
  0x69   :  { %v246_v32 = vcombine.high %v244_v30, %v244_v30 }
  0x6e   :  { %2763 = vmatmul.mubr.bf16.vlgmr.msra.gmra.mrb[0].mxu1 %v1307_v33  ;;  %4963 = vmatmul.mubr.bf16.vlgmr.msra.gmra.mrb[0].mxu0 %v1417_v34  ;;  %v721_v33 = vcombine.high %v713_v31, %v713_v31  ;;  %v1315_v34 = vpack.c.bf16 %v237_v13, %v237_v13  ;;  %v24_v13 = vld [vmem:[%s8496_s0 + $0x40] sm:$0xff] }
  0x6f   :  { %4971 = vmatpush1.bf16.xpose.msra.mxu0 %v6996_v37  ;;  %2771 = vmatpush1.bf16.xpose.msra.mxu1 %v6886_v38  ;;  %v1526_v37 = vld [vmem:[%s8497_s1 + $0x70] sm:$0xff]  ;;  %v7004_v38 = vcombine.low %v1580_v19, %v1580_v19  ;;  %v271_v14 = vrot.slane %v24_v13, %v7887_v20  ;;  %v1431_v19 = vpack.c.bf16 %v730_v63, %v730_v63 }
  0x70   :  { %2802 = vmatprep.mubr.bf16.mxu1 %v1310_v39  ;;  %5002 = vmatprep.mubr.bf16.mxu0 %v1420_v40  ;;  %v6894_v39 = vcombine.low %v1525_v21, %v1525_v21  ;;  %v1318_v40 = vpack.c.bf16 %v246_v32, %v246_v32  ;;  %v1428_v41 = vpack.c.bf16 %v721_v33, %v721_v33  ;;  %v1584_v21 = vld [vmem:[%s8497_s1 + $0x240] sm:$0xff] }
  0x71   :  { %5010 = vmatprep.subr.bf16.mxu0 %v6999_v42  ;;  %2810 = vmatprep.subr.bf16.mxu1 %v6889_v43  ;;  %v706_v42 = vcombine.high %v50_v29, %v50_v29  ;;  %v7007_v43 = vcombine.high %v1581_v36, %v1581_v36  ;;  %v6897_v44 = vcombine.high %v1526_v37, %v1526_v37 }
  0x72   :  { %v279_v16 = vcombine.high %v271_v14, %v271_v14 }
  0x73   :  { %v720_v47 = vrot.slane %v706_v42, %v7887_v20 }
  0x75   :  { %v1429_v3 = vpack.c.bf16 %v720_v47, %v720_v47 }
  0x7a   :  { %2803 = vmatmul.mubr.bf16.vlgmr.msra.gmra.mrb[0].mxu1 %v1309_v49  ;;  %5003 = vmatmul.mubr.bf16.vlgmr.msra.gmra.mrb[0].mxu0 %v1419_v50  ;;  %v722_v49 = vcombine.high %v720_v47, %v720_v47  ;;  %v1317_v50 = vpack.c.bf16 %v244_v30, %v244_v30  ;;  %v52_v30 = vld [vmem:[%s8496_s0 + $0x120] sm:$0xff] }
  0x7b   :  { %5011 = vmatpush1.bf16.xpose.msra.mxu0 %v6998_v53  ;;  %2811 = vmatpush1.bf16.xpose.msra.mxu1 %v6888_v54  ;;  %v1527_v53 = vld [vmem:[%s8497_s1 + $0x78] sm:$0xff]  ;;  %v7006_v54 = vcombine.low %v1581_v36, %v1581_v36  ;;  %v747_v32 = vrot.slane %v52_v30, %v7887_v20 }
  0x7c   :  { %2842 = vmatprep.mubr.bf16.mxu1 %v1312_v55  ;;  %5042 = vmatprep.mubr.bf16.mxu0 %v1422_v56  ;;  %v6896_v55 = vcombine.low %v1526_v37, %v1526_v37  ;;  %v1320_v56 = vpack.c.bf16 %v262_v48, %v262_v48  ;;  %v1430_v57 = vpack.c.bf16 %v722_v49, %v722_v49  ;;  %v1585_v37 = vld [vmem:[%s8497_s1 + $0x248] sm:$0xff] }
  0x7d   :  { %5050 = vmatprep.subr.bf16.mxu0 %v7001_v58  ;;  %2850 = vmatprep.subr.bf16.mxu1 %v6891_v59  ;;  %v247_v58 = vcombine.high %v23_v45, %v23_v45  ;;  %v7009_v59 = vcombine.high %v1582_v52, %v1582_v52  ;;  %v6899_v60 = vcombine.high %v1527_v53, %v1527_v53 }
  0x7f   :  { %v261_v62 = vrot.slane %v247_v58, %v7887_v20 }
  0x81   :  { %v263_v0 = vcombine.high %v261_v62, %v261_v62 }
  0x86   :  { %2843 = vmatmul.mubr.bf16.vlgmr.msra.gmra.mrb[0].mxu1 %v1311_v1  ;;  %5043 = vmatmul.mubr.bf16.vlgmr.msra.gmra.mrb[0].mxu0 %v1421_v2  ;;  %v738_v1 = vcombine.high %v730_v63, %v730_v63  ;;  %v1319_v2 = vpack.c.bf16 %v254_v46, %v254_v46  ;;  %v25_v46 = vld [vmem:[%s8496_s0 + $0x48] sm:$0xff] }
  0x87   :  { %5051 = vmatpush1.bf16.xpose.msra.mxu0 %v7000_v5  ;;  %2851 = vmatpush1.bf16.xpose.msra.mxu1 %v6890_v6  ;;  %v1528_v5 = vld [vmem:[%s8497_s1 + $0x80] sm:$0xff]  ;;  %v7008_v6 = vcombine.low %v1582_v52, %v1582_v52  ;;  %v288_v47 = vrot.slane %v25_v46, %v7887_v20  ;;  %v1435_v52 = vpack.c.bf16 %v747_v32, %v747_v32 }
  0x88   :  { %2882 = vmatprep.mubr.bf16.mxu1 %v1314_v7  ;;  %5082 = vmatprep.mubr.bf16.mxu0 %v1424_v8  ;;  %v6898_v7 = vcombine.low %v1527_v53, %v1527_v53  ;;  %v1322_v8 = vpack.c.bf16 %v263_v0, %v263_v0  ;;  %v1432_v9 = vpack.c.bf16 %v738_v1, %v738_v1  ;;  %v1586_v53 = vld [vmem:[%s8497_s1 + $0x250] sm:$0xff] }
  0x89   :  { %5090 = vmatprep.subr.bf16.mxu0 %v7003_v10  ;;  %2890 = vmatprep.subr.bf16.mxu1 %v6893_v11  ;;  %v723_v10 = vcombine.high %v51_v61, %v51_v61  ;;  %v7011_v11 = vcombine.high %v1583_v4, %v1583_v4  ;;  %v6901_v12 = vcombine.high %v1528_v5, %v1528_v5 }
  0x8a   :  { %v296_v49 = vcombine.high %v288_v47, %v288_v47 }
  0x8b   :  { %v737_v15 = vrot.slane %v723_v10, %v7887_v20 }
  0x8d   :  { %v1433_v36 = vpack.c.bf16 %v737_v15, %v737_v15 }
  0x92   :  { %2883 = vmatmul.mubr.bf16.vlgmr.msra.gmra.mrb[0].mxu1 %v1313_v17  ;;  %5083 = vmatmul.mubr.bf16.vlgmr.msra.gmra.mrb[0].mxu0 %v1423_v18  ;;  %v739_v17 = vcombine.high %v737_v15, %v737_v15  ;;  %v1321_v18 = vpack.c.bf16 %v261_v62, %v261_v62  ;;  %v53_v62 = vld [vmem:[%s8496_s0 + $0x128] sm:$0xff] }
  0x93   :  { %5091 = vmatpush1.bf16.xpose.msra.mxu0 %v7002_v22  ;;  %2891 = vmatpush1.bf16.xpose.msra.mxu1 %v6892_v23  ;;  %v1529_v22 = vld [vmem:[%s8497_s1 + $0x88] sm:$0xff]  ;;  %v7010_v23 = vcombine.low %v1583_v4, %v1583_v4  ;;  %v764_v0 = vrot.slane %v53_v62, %v7887_v20 }
  0x94   :  { %2922 = vmatprep.mubr.bf16.mxu1 %v1316_v24  ;;  %5122 = vmatprep.mubr.bf16.mxu0 %v1426_v25  ;;  %v6900_v24 = vcombine.low %v1528_v5, %v1528_v5  ;;  %v1324_v25 = vpack.c.bf16 %v279_v16, %v279_v16  ;;  %v1434_v26 = vpack.c.bf16 %v739_v17, %v739_v17  ;;  %v1587_v5 = vld [vmem:[%s8497_s1 + $0x258] sm:$0xff] }
  0x95   :  { %5130 = vmatprep.subr.bf16.mxu0 %v7005_v27  ;;  %2930 = vmatprep.subr.bf16.mxu1 %v6895_v28  ;;  %v264_v27 = vcombine.high %v24_v13, %v24_v13  ;;  %v7013_v28 = vcombine.high %v1584_v21, %v1584_v21  ;;  %v6903_v29 = vcombine.high %v1529_v22, %v1529_v22 }
  0x97   :  { %v278_v31 = vrot.slane %v264_v27, %v7887_v20 }
  0x99   :  { %v280_v33 = vcombine.high %v278_v31, %v278_v31 }
  0x9e   :  { %2923 = vmatmul.mubr.bf16.vlgmr.msra.gmra.mrb[0].mxu1 %v1315_v34  ;;  %5123 = vmatmul.mubr.bf16.vlgmr.msra.gmra.mrb[0].mxu0 %v1425_v35  ;;  %v755_v34 = vcombine.high %v747_v32, %v747_v32  ;;  %v1323_v35 = vpack.c.bf16 %v271_v14, %v271_v14  ;;  %v26_v14 = vld [vmem:[%s8496_s0 + $0x50] sm:$0xff] }
  0x9f   :  { %5131 = vmatpush1.bf16.xpose.msra.mxu0 %v7004_v38  ;;  %2931 = vmatpush1.bf16.xpose.msra.mxu1 %v6894_v39  ;;  %v1530_v38 = vld [vmem:[%s8497_s1 + $0x90] sm:$0xff]  ;;  %v7012_v39 = vcombine.low %v1584_v21, %v1584_v21  ;;  %v305_v15 = vrot.slane %v26_v14, %v7887_v20  ;;  %v1439_v21 = vpack.c.bf16 %v764_v0, %v764_v0 }
  0xa0   :  { %2962 = vmatprep.mubr.bf16.mxu1 %v1318_v40  ;;  %5162 = vmatprep.mubr.bf16.mxu0 %v1428_v41  ;;  %v6902_v40 = vcombine.low %v1529_v22, %v1529_v22  ;;  %v1326_v41 = vpack.c.bf16 %v280_v33, %v280_v33  ;;  %v1436_v42 = vpack.c.bf16 %v755_v34, %v755_v34  ;;  %v1588_v22 = vld [vmem:[%s8497_s1 + $0x260] sm:$0xff] }
  0xa1   :  { %5170 = vmatprep.subr.bf16.mxu0 %v7007_v43  ;;  %2970 = vmatprep.subr.bf16.mxu1 %v6897_v44  ;;  %v740_v43 = vcombine.high %v52_v30, %v52_v30  ;;  %v7015_v44 = vcombine.high %v1585_v37, %v1585_v37  ;;  %v6905_v45 = vcombine.high %v1530_v38, %v1530_v38 }
  0xa2   :  { %v313_v17 = vcombine.high %v305_v15, %v305_v15 }
  0xa3   :  { %v754_v48 = vrot.slane %v740_v43, %v7887_v20 }
  0xa5   :  { %v1437_v4 = vpack.c.bf16 %v754_v48, %v754_v48 }
  0xaa   :  { %2963 = vmatmul.mubr.bf16.vlgmr.msra.gmra.mrb[0].mxu1 %v1317_v50  ;;  %5163 = vmatmul.mubr.bf16.vlgmr.msra.gmra.mrb[0].mxu0 %v1427_v51  ;;  %v756_v50 = vcombine.high %v754_v48, %v754_v48  ;;  %v1325_v51 = vpack.c.bf16 %v278_v31, %v278_v31  ;;  %v54_v31 = vld [vmem:[%s8496_s0 + $0x130] sm:$0xff] }
  0xab   :  { %5171 = vmatpush1.bf16.xpose.msra.mxu0 %v7006_v54  ;;  %2971 = vmatpush1.bf16.xpose.msra.mxu1 %v6896_v55  ;;  %v1531_v54 = vld [vmem:[%s8497_s1 + $0x98] sm:$0xff]  ;;  %v7014_v55 = vcombine.low %v1585_v37, %v1585_v37  ;;  %v781_v33 = vrot.slane %v54_v31, %v7887_v20 }
  0xac   :  { %3002 = vmatprep.mubr.bf16.mxu1 %v1320_v56  ;;  %5202 = vmatprep.mubr.bf16.mxu0 %v1430_v57  ;;  %v6904_v56 = vcombine.low %v1530_v38, %v1530_v38  ;;  %v1328_v57 = vpack.c.bf16 %v296_v49, %v296_v49  ;;  %v1438_v58 = vpack.c.bf16 %v756_v50, %v756_v50  ;;  %v1589_v38 = vld [vmem:[%s8497_s1 + $0x268] sm:$0xff] }
  0xad   :  { %5210 = vmatprep.subr.bf16.mxu0 %v7009_v59  ;;  %3010 = vmatprep.subr.bf16.mxu1 %v6899_v60  ;;  %v281_v59 = vcombine.high %v25_v46, %v25_v46  ;;  %v7017_v60 = vcombine.high %v1586_v53, %v1586_v53  ;;  %v6907_v61 = vcombine.high %v1531_v54, %v1531_v54 }
  0xaf   :  { %v295_v63 = vrot.slane %v281_v59, %v7887_v20 }
  0xb1   :  { %v297_v1 = vcombine.high %v295_v63, %v295_v63 }
  0xb6   :  { %3003 = vmatmul.mubr.bf16.vlgmr.msra.gmra.mrb[0].mxu1 %v1319_v2  ;;  %5203 = vmatmul.mubr.bf16.vlgmr.msra.gmra.mrb[0].mxu0 %v1429_v3  ;;  %v772_v2 = vcombine.high %v764_v0, %v764_v0  ;;  %v1327_v3 = vpack.c.bf16 %v288_v47, %v288_v47  ;;  %v27_v47 = vld [vmem:[%s8496_s0 + $0x58] sm:$0xff] }
  0xb7   :  { %5211 = vmatpush1.bf16.xpose.msra.mxu0 %v7008_v6  ;;  %3011 = vmatpush1.bf16.xpose.msra.mxu1 %v6898_v7  ;;  %v1532_v6 = vld [vmem:[%s8497_s1 + $0xa0] sm:$0xff]  ;;  %v7016_v7 = vcombine.low %v1586_v53, %v1586_v53  ;;  %v322_v48 = vrot.slane %v27_v47, %v7887_v20  ;;  %v1443_v53 = vpack.c.bf16 %v781_v33, %v781_v33 }
  0xb8   :  { %3042 = vmatprep.mubr.bf16.mxu1 %v1322_v8  ;;  %5242 = vmatprep.mubr.bf16.mxu0 %v1432_v9  ;;  %v6906_v8 = vcombine.low %v1531_v54, %v1531_v54  ;;  %v1330_v9 = vpack.c.bf16 %v297_v1, %v297_v1  ;;  %v1440_v10 = vpack.c.bf16 %v772_v2, %v772_v2  ;;  %v1590_v54 = vld [vmem:[%s8497_s1 + $0x270] sm:$0xff] }
  0xb9   :  { %5250 = vmatprep.subr.bf16.mxu0 %v7011_v11  ;;  %3050 = vmatprep.subr.bf16.mxu1 %v6901_v12  ;;  %v757_v11 = vcombine.high %v53_v62, %v53_v62  ;;  %v7019_v12 = vcombine.high %v1587_v5, %v1587_v5  ;;  %v6909_v13 = vcombine.high %v1532_v6, %v1532_v6 }
  0xba   :  { %v330_v50 = vcombine.high %v322_v48, %v322_v48 }
  0xbb   :  { %v771_v16 = vrot.slane %v757_v11, %v7887_v20 }
  0xbd   :  { %v1441_v37 = vpack.c.bf16 %v771_v16, %v771_v16 }
  0xc2   :  { %3043 = vmatmul.mubr.bf16.vlgmr.msra.gmra.mrb[0].mxu1 %v1321_v18  ;;  %5243 = vmatmul.mubr.bf16.vlgmr.msra.gmra.mrb[0].mxu0 %v1431_v19  ;;  %v773_v18 = vcombine.high %v771_v16, %v771_v16  ;;  %v1329_v19 = vpack.c.bf16 %v295_v63, %v295_v63  ;;  %v55_v63 = vld [vmem:[%s8496_s0 + $0x138] sm:$0xff] }
  0xc3   :  { %5251 = vmatpush1.bf16.xpose.msra.mxu0 %v7010_v23  ;;  %3051 = vmatpush1.bf16.xpose.msra.mxu1 %v6900_v24  ;;  %v1533_v23 = vld [vmem:[%s8497_s1 + $0xa8] sm:$0xff]  ;;  %v7018_v24 = vcombine.low %v1587_v5, %v1587_v5  ;;  %v798_v1 = vrot.slane %v55_v63, %v7887_v20 }
  0xc4   :  { %3082 = vmatprep.mubr.bf16.mxu1 %v1324_v25  ;;  %5282 = vmatprep.mubr.bf16.mxu0 %v1434_v26  ;;  %v6908_v25 = vcombine.low %v1532_v6, %v1532_v6  ;;  %v1332_v26 = vpack.c.bf16 %v313_v17, %v313_v17  ;;  %v1442_v27 = vpack.c.bf16 %v773_v18, %v773_v18  ;;  %v1591_v6 = vld [vmem:[%s8497_s1 + $0x278] sm:$0xff] }
  0xc5   :  { %5290 = vmatprep.subr.bf16.mxu0 %v7013_v28  ;;  %3090 = vmatprep.subr.bf16.mxu1 %v6903_v29  ;;  %v298_v28 = vcombine.high %v26_v14, %v26_v14  ;;  %v7021_v29 = vcombine.high %v1588_v22, %v1588_v22  ;;  %v6911_v30 = vcombine.high %v1533_v23, %v1533_v23 }
  0xc7   :  { %v312_v32 = vrot.slane %v298_v28, %v7887_v20 }
  0xc9   :  { %v314_v34 = vcombine.high %v312_v32, %v312_v32 }
  0xce   :  { %3083 = vmatmul.mubr.bf16.vlgmr.msra.gmra.mrb[0].mxu1 %v1323_v35  ;;  %5283 = vmatmul.mubr.bf16.vlgmr.msra.gmra.mrb[0].mxu0 %v1433_v36  ;;  %v789_v35 = vcombine.high %v781_v33, %v781_v33  ;;  %v1331_v36 = vpack.c.bf16 %v305_v15, %v305_v15  ;;  %v28_v15 = vld [vmem:[%s8496_s0 + $0x60] sm:$0xff] }
  0xcf   :  { %5291 = vmatpush1.bf16.xpose.msra.mxu0 %v7012_v39  ;;  %3091 = vmatpush1.bf16.xpose.msra.mxu1 %v6902_v40  ;;  %v1534_v39 = vld [vmem:[%s8497_s1 + $0xb0] sm:$0xff]  ;;  %v7020_v40 = vcombine.low %v1588_v22, %v1588_v22  ;;  %v339_v16 = vrot.slane %v28_v15, %v7887_v20  ;;  %v1447_v22 = vpack.c.bf16 %v798_v1, %v798_v1 }
  0xd0   :  { %3122 = vmatprep.mubr.bf16.mxu1 %v1326_v41  ;;  %5322 = vmatprep.mubr.bf16.mxu0 %v1436_v42  ;;  %v6910_v41 = vcombine.low %v1533_v23, %v1533_v23  ;;  %v1334_v42 = vpack.c.bf16 %v314_v34, %v314_v34  ;;  %v1444_v43 = vpack.c.bf16 %v789_v35, %v789_v35  ;;  %v1592_v23 = vld [vmem:[%s8497_s1 + $0x280] sm:$0xff] }
  0xd1   :  { %5330 = vmatprep.subr.bf16.mxu0 %v7015_v44  ;;  %3130 = vmatprep.subr.bf16.mxu1 %v6905_v45  ;;  %v774_v44 = vcombine.high %v54_v31, %v54_v31  ;;  %v7023_v45 = vcombine.high %v1589_v38, %v1589_v38  ;;  %v6913_v46 = vcombine.high %v1534_v39, %v1534_v39 }
  0xd2   :  { %v347_v18 = vcombine.high %v339_v16, %v339_v16 }
  0xd3   :  { %v788_v49 = vrot.slane %v774_v44, %v7887_v20 }
  0xd5   :  { %v1445_v5 = vpack.c.bf16 %v788_v49, %v788_v49 }
  0xda   :  { %3123 = vmatmul.mubr.bf16.vlgmr.msra.gmra.mrb[0].mxu1 %v1325_v51  ;;  %5323 = vmatmul.mubr.bf16.vlgmr.msra.gmra.mrb[0].mxu0 %v1435_v52  ;;  %v790_v51 = vcombine.high %v788_v49, %v788_v49  ;;  %v1333_v52 = vpack.c.bf16 %v312_v32, %v312_v32  ;;  %v56_v32 = vld [vmem:[%s8496_s0 + $0x140] sm:$0xff] }
  0xdb   :  { %5331 = vmatpush1.bf16.xpose.msra.mxu0 %v7014_v55  ;;  %3131 = vmatpush1.bf16.xpose.msra.mxu1 %v6904_v56  ;;  %v1535_v55 = vld [vmem:[%s8497_s1 + $0xb8] sm:$0xff]  ;;  %v7022_v56 = vcombine.low %v1589_v38, %v1589_v38  ;;  %v815_v34 = vrot.slane %v56_v32, %v7887_v20 }
  0xdc   :  { %3162 = vmatprep.mubr.bf16.mxu1 %v1328_v57  ;;  %5362 = vmatprep.mubr.bf16.mxu0 %v1438_v58  ;;  %v6912_v57 = vcombine.low %v1534_v39, %v1534_v39  ;;  %v1336_v58 = vpack.c.bf16 %v330_v50, %v330_v50  ;;  %v1446_v59 = vpack.c.bf16 %v790_v51, %v790_v51  ;;  %v1593_v39 = vld [vmem:[%s8497_s1 + $0x288] sm:$0xff] }
  0xdd   :  { %5370 = vmatprep.subr.bf16.mxu0 %v7017_v60  ;;  %3170 = vmatprep.subr.bf16.mxu1 %v6907_v61  ;;  %v315_v60 = vcombine.high %v27_v47, %v27_v47  ;;  %v7025_v61 = vcombine.high %v1590_v54, %v1590_v54  ;;  %v6915_v62 = vcombine.high %v1535_v55, %v1535_v55 }
  0xdf   :  { %v329_v0 = vrot.slane %v315_v60, %v7887_v20 }
  0xe1   :  { %v331_v2 = vcombine.high %v329_v0, %v329_v0 }
  0xe6   :  { %3163 = vmatmul.mubr.bf16.vlgmr.msra.gmra.mrb[0].mxu1 %v1327_v3  ;;  %5363 = vmatmul.mubr.bf16.vlgmr.msra.gmra.mrb[0].mxu0 %v1437_v4  ;;  %v806_v3 = vcombine.high %v798_v1, %v798_v1  ;;  %v1335_v4 = vpack.c.bf16 %v322_v48, %v322_v48  ;;  %v29_v48 = vld [vmem:[%s8496_s0 + $0x68] sm:$0xff] }
  0xe7   :  { %5371 = vmatpush1.bf16.xpose.msra.mxu0 %v7016_v7  ;;  %3171 = vmatpush1.bf16.xpose.msra.mxu1 %v6906_v8  ;;  %v1536_v7 = vld [vmem:[%s8497_s1 + $0xc0] sm:$0xff]  ;;  %v7024_v8 = vcombine.low %v1590_v54, %v1590_v54  ;;  %v356_v49 = vrot.slane %v29_v48, %v7887_v20  ;;  %v1451_v54 = vpack.c.bf16 %v815_v34, %v815_v34 }
  0xe8   :  { %3202 = vmatprep.mubr.bf16.mxu1 %v1330_v9  ;;  %5402 = vmatprep.mubr.bf16.mxu0 %v1440_v10  ;;  %v6914_v9 = vcombine.low %v1535_v55, %v1535_v55  ;;  %v1338_v10 = vpack.c.bf16 %v331_v2, %v331_v2  ;;  %v1448_v11 = vpack.c.bf16 %v806_v3, %v806_v3  ;;  %v1594_v55 = vld [vmem:[%s8497_s1 + $0x290] sm:$0xff] }
  0xe9   :  { %5410 = vmatprep.subr.bf16.mxu0 %v7019_v12  ;;  %3210 = vmatprep.subr.bf16.mxu1 %v6909_v13  ;;  %v791_v12 = vcombine.high %v55_v63, %v55_v63  ;;  %v7027_v13 = vcombine.high %v1591_v6, %v1591_v6  ;;  %v6917_v14 = vcombine.high %v1536_v7, %v1536_v7 }
  0xea   :  { %v364_v51 = vcombine.high %v356_v49, %v356_v49 }
  0xeb   :  { %v805_v17 = vrot.slane %v791_v12, %v7887_v20 }
  0xed   :  { %v1449_v38 = vpack.c.bf16 %v805_v17, %v805_v17 }
  0xf2   :  { %3203 = vmatmul.mubr.bf16.vlgmr.msra.gmra.mrb[0].mxu1 %v1329_v19  ;;  %5403 = vmatmul.mubr.bf16.vlgmr.msra.gmra.mrb[0].mxu0 %v1439_v21  ;;  %v807_v19 = vcombine.high %v805_v17, %v805_v17  ;;  %v1337_v21 = vpack.c.bf16 %v329_v0, %v329_v0  ;;  %v57_v0 = vld [vmem:[%s8496_s0 + $0x148] sm:$0xff] }
  0xf3   :  { %5411 = vmatpush1.bf16.xpose.msra.mxu0 %v7018_v24  ;;  %3211 = vmatpush1.bf16.xpose.msra.mxu1 %v6908_v25  ;;  %v1537_v24 = vld [vmem:[%s8497_s1 + $0xc8] sm:$0xff]  ;;  %v7026_v25 = vcombine.low %v1591_v6, %v1591_v6  ;;  %v832_v2 = vrot.slane %v57_v0, %v7887_v20 }
  0xf4   :  { %3242 = vmatprep.mubr.bf16.mxu1 %v1332_v26  ;;  %5442 = vmatprep.mubr.bf16.mxu0 %v1442_v27  ;;  %v6916_v26 = vcombine.low %v1536_v7, %v1536_v7  ;;  %v1340_v27 = vpack.c.bf16 %v347_v18, %v347_v18  ;;  %v1450_v28 = vpack.c.bf16 %v807_v19, %v807_v19  ;;  %v1595_v7 = vld [vmem:[%s8497_s1 + $0x298] sm:$0xff] }
  0xf5   :  { %5450 = vmatprep.subr.bf16.mxu0 %v7021_v29  ;;  %3250 = vmatprep.subr.bf16.mxu1 %v6911_v30  ;;  %v332_v29 = vcombine.high %v28_v15, %v28_v15  ;;  %v7029_v30 = vcombine.high %v1592_v23, %v1592_v23  ;;  %v6919_v31 = vcombine.high %v1537_v24, %v1537_v24 }
  0xf7   :  { %v346_v33 = vrot.slane %v332_v29, %v7887_v20 }
  0xf9   :  { %v348_v35 = vcombine.high %v346_v33, %v346_v33 }
  0xfe   :  { %3243 = vmatmul.mubr.bf16.vlgmr.msra.gmra.mrb[0].mxu1 %v1331_v36  ;;  %5443 = vmatmul.mubr.bf16.vlgmr.msra.gmra.mrb[0].mxu0 %v1441_v37  ;;  %v823_v36 = vcombine.high %v815_v34, %v815_v34  ;;  %v1339_v37 = vpack.c.bf16 %v339_v16, %v339_v16  ;;  %v30_v16 = vld [vmem:[%s8496_s0 + $0x70] sm:$0xff] }
  0xff   :  { %5451 = vmatpush1.bf16.xpose.msra.mxu0 %v7020_v40  ;;  %3251 = vmatpush1.bf16.xpose.msra.mxu1 %v6910_v41  ;;  %v1538_v40 = vld [vmem:[%s8497_s1 + $0xd0] sm:$0xff]  ;;  %v7028_v41 = vcombine.low %v1592_v23, %v1592_v23  ;;  %v373_v17 = vrot.slane %v30_v16, %v7887_v20  ;;  %v1455_v23 = vpack.c.bf16 %v832_v2, %v832_v2 }
 0x100   :  { %3282 = vmatprep.mubr.bf16.mxu1 %v1334_v42  ;;  %5482 = vmatprep.mubr.bf16.mxu0 %v1444_v43  ;;  %v6918_v42 = vcombine.low %v1537_v24, %v1537_v24  ;;  %v1342_v43 = vpack.c.bf16 %v348_v35, %v348_v35  ;;  %v1452_v44 = vpack.c.bf16 %v823_v36, %v823_v36  ;;  %v1596_v24 = vld [vmem:[%s8497_s1 + $0x2a0] sm:$0xff] }
 0x101   :  { %5490 = vmatprep.subr.bf16.mxu0 %v7023_v45  ;;  %3290 = vmatprep.subr.bf16.mxu1 %v6913_v46  ;;  %v808_v45 = vcombine.high %v56_v32, %v56_v32  ;;  %v7031_v46 = vcombine.high %v1593_v39, %v1593_v39  ;;  %v6921_v47 = vcombine.high %v1538_v40, %v1538_v40 }
 0x102   :  { %v381_v19 = vcombine.high %v373_v17, %v373_v17 }
 0x103   :  { %v822_v50 = vrot.slane %v808_v45, %v7887_v20 }
 0x105   :  { %v1453_v6 = vpack.c.bf16 %v822_v50, %v822_v50 }
 0x10a   :  { %3283 = vmatmul.mubr.bf16.vlgmr.msra.gmra.mrb[0].mxu1 %v1333_v52  ;;  %5483 = vmatmul.mubr.bf16.vlgmr.msra.gmra.mrb[0].mxu0 %v1443_v53  ;;  %v824_v52 = vcombine.high %v822_v50, %v822_v50  ;;  %v1341_v53 = vpack.c.bf16 %v346_v33, %v346_v33  ;;  %v58_v33 = vld [vmem:[%s8496_s0 + $0x150] sm:$0xff] }
 0x10b   :  { %5491 = vmatpush1.bf16.xpose.msra.mxu0 %v7022_v56  ;;  %3291 = vmatpush1.bf16.xpose.msra.mxu1 %v6912_v57  ;;  %v1539_v56 = vld [vmem:[%s8497_s1 + $0xd8] sm:$0xff]  ;;  %v7030_v57 = vcombine.low %v1593_v39, %v1593_v39  ;;  %v849_v35 = vrot.slane %v58_v33, %v7887_v20 }
 0x10c   :  { %3322 = vmatprep.mubr.bf16.mxu1 %v1336_v58  ;;  %5522 = vmatprep.mubr.bf16.mxu0 %v1446_v59  ;;  %v6920_v58 = vcombine.low %v1538_v40, %v1538_v40  ;;  %v1344_v59 = vpack.c.bf16 %v364_v51, %v364_v51  ;;  %v1454_v60 = vpack.c.bf16 %v824_v52, %v824_v52  ;;  %v1597_v40 = vld [vmem:[%s8497_s1 + $0x2a8] sm:$0xff] }
 0x10d   :  { %5530 = vmatprep.subr.bf16.mxu0 %v7025_v61  ;;  %3330 = vmatprep.subr.bf16.mxu1 %v6915_v62  ;;  %v349_v61 = vcombine.high %v29_v48, %v29_v48  ;;  %v7033_v62 = vcombine.high %v1594_v55, %v1594_v55  ;;  %v6923_v63 = vcombine.high %v1539_v56, %v1539_v56 }
 0x10f   :  { %v363_v1 = vrot.slane %v349_v61, %v7887_v20 }
 0x111   :  { %v365_v3 = vcombine.high %v363_v1, %v363_v1 }
 0x116   :  { %3323 = vmatmul.mubr.bf16.vlgmr.msra.gmra.mrb[0].mxu1 %v1335_v4  ;;  %5523 = vmatmul.mubr.bf16.vlgmr.msra.gmra.mrb[0].mxu0 %v1445_v5  ;;  %v840_v4 = vcombine.high %v832_v2, %v832_v2  ;;  %v1343_v5 = vpack.c.bf16 %v356_v49, %v356_v49  ;;  %v31_v49 = vld [vmem:[%s8496_s0 + $0x78] sm:$0xff] }
 0x117   :  { %5531 = vmatpush1.bf16.xpose.msra.mxu0 %v7024_v8  ;;  %3331 = vmatpush1.bf16.xpose.msra.mxu1 %v6914_v9  ;;  %v1540_v8 = vld [vmem:[%s8497_s1 + $0xe0] sm:$0xff]  ;;  %v7032_v9 = vcombine.low %v1594_v55, %v1594_v55  ;;  %v390_v50 = vrot.slane %v31_v49, %v7887_v20  ;;  %v1459_v55 = vpack.c.bf16 %v849_v35, %v849_v35 }
 0x118   :  { %3362 = vmatprep.mubr.bf16.mxu1 %v1338_v10  ;;  %5562 = vmatprep.mubr.bf16.mxu0 %v1448_v11  ;;  %v6922_v10 = vcombine.low %v1539_v56, %v1539_v56  ;;  %v1346_v11 = vpack.c.bf16 %v365_v3, %v365_v3  ;;  %v1456_v12 = vpack.c.bf16 %v840_v4, %v840_v4  ;;  %v1598_v56 = vld [vmem:[%s8497_s1 + $0x2b0] sm:$0xff] }
 0x119   :  { %5570 = vmatprep.subr.bf16.mxu0 %v7027_v13  ;;  %3370 = vmatprep.subr.bf16.mxu1 %v6917_v14  ;;  %v825_v13 = vcombine.high %v57_v0, %v57_v0  ;;  %v7035_v14 = vcombine.high %v1595_v7, %v1595_v7  ;;  %v6925_v15 = vcombine.high %v1540_v8, %v1540_v8 }
 0x11a   :  { %v398_v52 = vcombine.high %v390_v50, %v390_v50 }
 0x11b   :  { %v839_v18 = vrot.slane %v825_v13, %v7887_v20 }
 0x11d   :  { %v1457_v39 = vpack.c.bf16 %v839_v18, %v839_v18 }
 0x122   :  { %3363 = vmatmul.mubr.bf16.vlgmr.msra.gmra.mrb[0].mxu1 %v1337_v21  ;;  %5563 = vmatmul.mubr.bf16.vlgmr.msra.gmra.mrb[0].mxu0 %v1447_v22  ;;  %v841_v21 = vcombine.high %v839_v18, %v839_v18  ;;  %v1345_v22 = vpack.c.bf16 %v363_v1, %v363_v1  ;;  %v59_v1 = vld [vmem:[%s8496_s0 + $0x158] sm:$0xff] }
 0x123   :  { %5571 = vmatpush1.bf16.xpose.msra.mxu0 %v7026_v25  ;;  %3371 = vmatpush1.bf16.xpose.msra.mxu1 %v6916_v26  ;;  %v1541_v25 = vld [vmem:[%s8497_s1 + $0xe8] sm:$0xff]  ;;  %v7034_v26 = vcombine.low %v1595_v7, %v1595_v7  ;;  %v866_v3 = vrot.slane %v59_v1, %v7887_v20 }
 0x124   :  { %3402 = vmatprep.mubr.bf16.mxu1 %v1340_v27  ;;  %5602 = vmatprep.mubr.bf16.mxu0 %v1450_v28  ;;  %v6924_v27 = vcombine.low %v1540_v8, %v1540_v8  ;;  %v1348_v28 = vpack.c.bf16 %v381_v19, %v381_v19  ;;  %v1458_v29 = vpack.c.bf16 %v841_v21, %v841_v21  ;;  %v1599_v8 = vld [vmem:[%s8497_s1 + $0x2b8] sm:$0xff] }
 0x125   :  { %5610 = vmatprep.subr.bf16.mxu0 %v7029_v30  ;;  %3410 = vmatprep.subr.bf16.mxu1 %v6919_v31  ;;  %v366_v30 = vcombine.high %v30_v16, %v30_v16  ;;  %v7037_v31 = vcombine.high %v1596_v24, %v1596_v24  ;;  %v6927_v32 = vcombine.high %v1541_v25, %v1541_v25 }
 0x127   :  { %v380_v34 = vrot.slane %v366_v30, %v7887_v20 }
 0x129   :  { %v382_v36 = vcombine.high %v380_v34, %v380_v34 }
 0x12e   :  { %3403 = vmatmul.mubr.bf16.vlgmr.msra.gmra.mrb[0].mxu1 %v1339_v37  ;;  %5603 = vmatmul.mubr.bf16.vlgmr.msra.gmra.mrb[0].mxu0 %v1449_v38  ;;  %v857_v37 = vcombine.high %v849_v35, %v849_v35  ;;  %v1347_v38 = vpack.c.bf16 %v373_v17, %v373_v17  ;;  %v32_v17 = vld [vmem:[%s8496_s0 + $0x80] sm:$0xff] }
 0x12f   :  { %5611 = vmatpush1.bf16.xpose.msra.mxu0 %v7028_v41  ;;  %3411 = vmatpush1.bf16.xpose.msra.mxu1 %v6918_v42  ;;  %v1542_v41 = vld [vmem:[%s8497_s1 + $0xf0] sm:$0xff]  ;;  %v7036_v42 = vcombine.low %v1596_v24, %v1596_v24  ;;  %v407_v18 = vrot.slane %v32_v17, %v7887_v20  ;;  %v1463_v24 = vpack.c.bf16 %v866_v3, %v866_v3 }
 0x130   :  { %3442 = vmatprep.mubr.bf16.mxu1 %v1342_v43  ;;  %5642 = vmatprep.mubr.bf16.mxu0 %v1452_v44  ;;  %v6926_v43 = vcombine.low %v1541_v25, %v1541_v25  ;;  %v1350_v44 = vpack.c.bf16 %v382_v36, %v382_v36  ;;  %v1460_v45 = vpack.c.bf16 %v857_v37, %v857_v37  ;;  %v1600_v25 = vld [vmem:[%s8497_s1 + $0x2c0] sm:$0xff] }
 0x131   :  { %5650 = vmatprep.subr.bf16.mxu0 %v7031_v46  ;;  %3450 = vmatprep.subr.bf16.mxu1 %v6921_v47  ;;  %v842_v46 = vcombine.high %v58_v33, %v58_v33  ;;  %v7039_v47 = vcombine.high %v1597_v40, %v1597_v40  ;;  %v6929_v48 = vcombine.high %v1542_v41, %v1542_v41 }
 0x132   :  { %v415_v21 = vcombine.high %v407_v18, %v407_v18 }
 0x133   :  { %v856_v51 = vrot.slane %v842_v46, %v7887_v20 }
 0x135   :  { %v1461_v7 = vpack.c.bf16 %v856_v51, %v856_v51 }
 0x13a   :  { %3443 = vmatmul.mubr.bf16.vlgmr.msra.gmra.mrb[0].mxu1 %v1341_v53  ;;  %5643 = vmatmul.mubr.bf16.vlgmr.msra.gmra.mrb[0].mxu0 %v1451_v54  ;;  %v858_v53 = vcombine.high %v856_v51, %v856_v51  ;;  %v1349_v54 = vpack.c.bf16 %v380_v34, %v380_v34  ;;  %v60_v34 = vld [vmem:[%s8496_s0 + $0x160] sm:$0xff] }
 0x13b   :  { %5651 = vmatpush1.bf16.xpose.msra.mxu0 %v7030_v57  ;;  %3451 = vmatpush1.bf16.xpose.msra.mxu1 %v6920_v58  ;;  %v1543_v57 = vld [vmem:[%s8497_s1 + $0xf8] sm:$0xff]  ;;  %v7038_v58 = vcombine.low %v1597_v40, %v1597_v40  ;;  %v883_v36 = vrot.slane %v60_v34, %v7887_v20 }
 0x13c   :  { %3482 = vmatprep.mubr.bf16.mxu1 %v1344_v59  ;;  %5682 = vmatprep.mubr.bf16.mxu0 %v1454_v60  ;;  %v6928_v59 = vcombine.low %v1542_v41, %v1542_v41  ;;  %v1352_v60 = vpack.c.bf16 %v398_v52, %v398_v52  ;;  %v1462_v61 = vpack.c.bf16 %v858_v53, %v858_v53  ;;  %v1601_v41 = vld [vmem:[%s8497_s1 + $0x2c8] sm:$0xff] }
 0x13d   :  { %5690 = vmatprep.subr.bf16.mxu0 %v7033_v62  ;;  %3490 = vmatprep.subr.bf16.mxu1 %v6923_v63  ;;  %v383_v62 = vcombine.high %v31_v49, %v31_v49  ;;  %v7041_v63 = vcombine.high %v1598_v56, %v1598_v56  ;;  %v6931_v0 = vcombine.high %v1543_v57, %v1543_v57 }
 0x13f   :  { %v397_v2 = vrot.slane %v383_v62, %v7887_v20 }
 0x141   :  { %v399_v4 = vcombine.high %v397_v2, %v397_v2 }
 0x146   :  { %3483 = vmatmul.mubr.bf16.vlgmr.msra.gmra.mrb[0].mxu1 %v1343_v5  ;;  %5683 = vmatmul.mubr.bf16.vlgmr.msra.gmra.mrb[0].mxu0 %v1453_v6  ;;  %v874_v5 = vcombine.high %v866_v3, %v866_v3  ;;  %v1351_v6 = vpack.c.bf16 %v390_v50, %v390_v50  ;;  %v33_v50 = vld [vmem:[%s8496_s0 + $0x88] sm:$0xff] }
 0x147   :  { %5691 = vmatpush1.bf16.xpose.msra.mxu0 %v7032_v9  ;;  %3491 = vmatpush1.bf16.xpose.msra.mxu1 %v6922_v10  ;;  %v1544_v9 = vld [vmem:[%s8497_s1 + $0x100] sm:$0xff]  ;;  %v7040_v10 = vcombine.low %v1598_v56, %v1598_v56  ;;  %v424_v51 = vrot.slane %v33_v50, %v7887_v20  ;;  %v1467_v56 = vpack.c.bf16 %v883_v36, %v883_v36 }
 0x148   :  { %3522 = vmatprep.mubr.bf16.mxu1 %v1346_v11  ;;  %5722 = vmatprep.mubr.bf16.mxu0 %v1456_v12  ;;  %v6930_v11 = vcombine.low %v1543_v57, %v1543_v57  ;;  %v1354_v12 = vpack.c.bf16 %v399_v4, %v399_v4  ;;  %v1464_v13 = vpack.c.bf16 %v874_v5, %v874_v5  ;;  %v1602_v57 = vld [vmem:[%s8497_s1 + $0x2d0] sm:$0xff] }
 0x149   :  { %5730 = vmatprep.subr.bf16.mxu0 %v7035_v14  ;;  %3530 = vmatprep.subr.bf16.mxu1 %v6925_v15  ;;  %v859_v14 = vcombine.high %v59_v1, %v59_v1  ;;  %v7043_v15 = vcombine.high %v1599_v8, %v1599_v8  ;;  %v6933_v16 = vcombine.high %v1544_v9, %v1544_v9 }
 0x14a   :  { %v432_v53 = vcombine.high %v424_v51, %v424_v51 }
 0x14b   :  { %v873_v19 = vrot.slane %v859_v14, %v7887_v20 }
 0x14d   :  { %v1465_v40 = vpack.c.bf16 %v873_v19, %v873_v19 }
 0x152   :  { %3523 = vmatmul.mubr.bf16.vlgmr.msra.gmra.mrb[0].mxu1 %v1345_v22  ;;  %5723 = vmatmul.mubr.bf16.vlgmr.msra.gmra.mrb[0].mxu0 %v1455_v23  ;;  %v875_v22 = vcombine.high %v873_v19, %v873_v19  ;;  %v1353_v23 = vpack.c.bf16 %v397_v2, %v397_v2  ;;  %v61_v2 = vld [vmem:[%s8496_s0 + $0x168] sm:$0xff] }
 0x153   :  { %5731 = vmatpush1.bf16.xpose.msra.mxu0 %v7034_v26  ;;  %3531 = vmatpush1.bf16.xpose.msra.mxu1 %v6924_v27  ;;  %v1545_v26 = vld [vmem:[%s8497_s1 + $0x108] sm:$0xff]  ;;  %v7042_v27 = vcombine.low %v1599_v8, %v1599_v8  ;;  %v900_v4 = vrot.slane %v61_v2, %v7887_v20 }
 0x154   :  { %3562 = vmatprep.mubr.bf16.mxu1 %v1348_v28  ;;  %5762 = vmatprep.mubr.bf16.mxu0 %v1458_v29  ;;  %v6932_v28 = vcombine.low %v1544_v9, %v1544_v9  ;;  %v1356_v29 = vpack.c.bf16 %v415_v21, %v415_v21  ;;  %v1466_v30 = vpack.c.bf16 %v875_v22, %v875_v22  ;;  %v1603_v9 = vld [vmem:[%s8497_s1 + $0x2d8] sm:$0xff] }
 0x155   :  { %5770 = vmatprep.subr.bf16.mxu0 %v7037_v31  ;;  %3570 = vmatprep.subr.bf16.mxu1 %v6927_v32  ;;  %v400_v31 = vcombine.high %v32_v17, %v32_v17  ;;  %v7045_v32 = vcombine.high %v1600_v25, %v1600_v25  ;;  %v6935_v33 = vcombine.high %v1545_v26, %v1545_v26 }
 0x157   :  { %v414_v35 = vrot.slane %v400_v31, %v7887_v20 }
 0x159   :  { %v416_v37 = vcombine.high %v414_v35, %v414_v35 }
 0x15e   :  { %3563 = vmatmul.mubr.bf16.vlgmr.msra.gmra.mrb[0].mxu1 %v1347_v38  ;;  %5763 = vmatmul.mubr.bf16.vlgmr.msra.gmra.mrb[0].mxu0 %v1457_v39  ;;  %v891_v38 = vcombine.high %v883_v36, %v883_v36  ;;  %v1355_v39 = vpack.c.bf16 %v407_v18, %v407_v18  ;;  %v34_v18 = vld [vmem:[%s8496_s0 + $0x90] sm:$0xff] }
 0x15f   :  { %5771 = vmatpush1.bf16.xpose.msra.mxu0 %v7036_v42  ;;  %3571 = vmatpush1.bf16.xpose.msra.mxu1 %v6926_v43  ;;  %v1546_v42 = vld [vmem:[%s8497_s1 + $0x110] sm:$0xff]  ;;  %v7044_v43 = vcombine.low %v1600_v25, %v1600_v25  ;;  %v441_v19 = vrot.slane %v34_v18, %v7887_v20  ;;  %v1471_v25 = vpack.c.bf16 %v900_v4, %v900_v4 }
 0x160   :  { %3602 = vmatprep.mubr.bf16.mxu1 %v1350_v44  ;;  %5802 = vmatprep.mubr.bf16.mxu0 %v1460_v45  ;;  %v6934_v44 = vcombine.low %v1545_v26, %v1545_v26  ;;  %v1358_v45 = vpack.c.bf16 %v416_v37, %v416_v37  ;;  %v1468_v46 = vpack.c.bf16 %v891_v38, %v891_v38  ;;  %v1604_v26 = vld [vmem:[%s8497_s1 + $0x2e0] sm:$0xff] }
 0x161   :  { %5810 = vmatprep.subr.bf16.mxu0 %v7039_v47  ;;  %3610 = vmatprep.subr.bf16.mxu1 %v6929_v48  ;;  %v876_v47 = vcombine.high %v60_v34, %v60_v34  ;;  %v7047_v48 = vcombine.high %v1601_v41, %v1601_v41  ;;  %v6937_v49 = vcombine.high %v1546_v42, %v1546_v42 }
 0x162   :  { %v449_v22 = vcombine.high %v441_v19, %v441_v19 }
 0x163   :  { %v890_v52 = vrot.slane %v876_v47, %v7887_v20 }
 0x165   :  { %v1469_v8 = vpack.c.bf16 %v890_v52, %v890_v52 }
 0x16a   :  { %3603 = vmatmul.mubr.bf16.vlgmr.msra.gmra.mrb[0].mxu1 %v1349_v54  ;;  %5803 = vmatmul.mubr.bf16.vlgmr.msra.gmra.mrb[0].mxu0 %v1459_v55  ;;  %v892_v54 = vcombine.high %v890_v52, %v890_v52  ;;  %v1357_v55 = vpack.c.bf16 %v414_v35, %v414_v35  ;;  %v62_v35 = vld [vmem:[%s8496_s0 + $0x170] sm:$0xff] }
 0x16b   :  { %5811 = vmatpush1.bf16.xpose.msra.mxu0 %v7038_v58  ;;  %3611 = vmatpush1.bf16.xpose.msra.mxu1 %v6928_v59  ;;  %v1547_v58 = vld [vmem:[%s8497_s1 + $0x118] sm:$0xff]  ;;  %v7046_v59 = vcombine.low %v1601_v41, %v1601_v41  ;;  %v917_v37 = vrot.slane %v62_v35, %v7887_v20 }
 0x16c   :  { %3642 = vmatprep.mubr.bf16.mxu1 %v1352_v60  ;;  %5842 = vmatprep.mubr.bf16.mxu0 %v1462_v61  ;;  %v6936_v60 = vcombine.low %v1546_v42, %v1546_v42  ;;  %v1360_v61 = vpack.c.bf16 %v432_v53, %v432_v53  ;;  %v1470_v62 = vpack.c.bf16 %v892_v54, %v892_v54  ;;  %v1605_v42 = vld [vmem:[%s8497_s1 + $0x2e8] sm:$0xff] }
 0x16d   :  { %5850 = vmatprep.subr.bf16.mxu0 %v7041_v63  ;;  %3650 = vmatprep.subr.bf16.mxu1 %v6931_v0  ;;  %v417_v63 = vcombine.high %v33_v50, %v33_v50  ;;  %v7049_v0 = vcombine.high %v1602_v57, %v1602_v57  ;;  %v6939_v1 = vcombine.high %v1547_v58, %v1547_v58 }
 0x16f   :  { %v431_v3 = vrot.slane %v417_v63, %v7887_v20 }
 0x171   :  { %v433_v5 = vcombine.high %v431_v3, %v431_v3 }
 0x176   :  { %3643 = vmatmul.mubr.bf16.vlgmr.msra.gmra.mrb[0].mxu1 %v1351_v6  ;;  %5843 = vmatmul.mubr.bf16.vlgmr.msra.gmra.mrb[0].mxu0 %v1461_v7  ;;  %v908_v6 = vcombine.high %v900_v4, %v900_v4  ;;  %v1359_v7 = vpack.c.bf16 %v424_v51, %v424_v51  ;;  %v35_v51 = vld [vmem:[%s8496_s0 + $0x98] sm:$0xff] }
 0x177   :  { %5851 = vmatpush1.bf16.xpose.msra.mxu0 %v7040_v10  ;;  %3651 = vmatpush1.bf16.xpose.msra.mxu1 %v6930_v11  ;;  %v1548_v10 = vld [vmem:[%s8497_s1 + $0x120] sm:$0xff]  ;;  %v7048_v11 = vcombine.low %v1602_v57, %v1602_v57  ;;  %v458_v52 = vrot.slane %v35_v51, %v7887_v20  ;;  %v1475_v57 = vpack.c.bf16 %v917_v37, %v917_v37 }
 0x178   :  { %3682 = vmatprep.mubr.bf16.mxu1 %v1354_v12  ;;  %5882 = vmatprep.mubr.bf16.mxu0 %v1464_v13  ;;  %v6938_v12 = vcombine.low %v1547_v58, %v1547_v58  ;;  %v1362_v13 = vpack.c.bf16 %v433_v5, %v433_v5  ;;  %v1472_v14 = vpack.c.bf16 %v908_v6, %v908_v6  ;;  %v1606_v58 = vld [vmem:[%s8497_s1 + $0x2f0] sm:$0xff] }
 0x179   :  { %5890 = vmatprep.subr.bf16.mxu0 %v7043_v15  ;;  %3690 = vmatprep.subr.bf16.mxu1 %v6933_v16  ;;  %v893_v15 = vcombine.high %v61_v2, %v61_v2  ;;  %v7051_v16 = vcombine.high %v1603_v9, %v1603_v9  ;;  %v6941_v17 = vcombine.high %v1548_v10, %v1548_v10 }
 0x17a   :  { %v466_v54 = vcombine.high %v458_v52, %v458_v52 }
 0x17b   :  { %v907_v21 = vrot.slane %v893_v15, %v7887_v20 }
 0x17d   :  { %v1473_v41 = vpack.c.bf16 %v907_v21, %v907_v21 }
 0x182   :  { %3683 = vmatmul.mubr.bf16.vlgmr.msra.gmra.mrb[0].mxu1 %v1353_v23  ;;  %5883 = vmatmul.mubr.bf16.vlgmr.msra.gmra.mrb[0].mxu0 %v1463_v24  ;;  %v909_v23 = vcombine.high %v907_v21, %v907_v21  ;;  %v1361_v24 = vpack.c.bf16 %v431_v3, %v431_v3  ;;  %v63_v3 = vld [vmem:[%s8496_s0 + $0x178] sm:$0xff] }
 0x183   :  { %5891 = vmatpush1.bf16.xpose.msra.mxu0 %v7042_v27  ;;  %3691 = vmatpush1.bf16.xpose.msra.mxu1 %v6932_v28  ;;  %v1549_v27 = vld [vmem:[%s8497_s1 + $0x128] sm:$0xff]  ;;  %v7050_v28 = vcombine.low %v1603_v9, %v1603_v9  ;;  %v934_v5 = vrot.slane %v63_v3, %v7887_v20 }
 0x184   :  { %3722 = vmatprep.mubr.bf16.mxu1 %v1356_v29  ;;  %5922 = vmatprep.mubr.bf16.mxu0 %v1466_v30  ;;  %v6940_v29 = vcombine.low %v1548_v10, %v1548_v10  ;;  %v1364_v30 = vpack.c.bf16 %v449_v22, %v449_v22  ;;  %v1474_v31 = vpack.c.bf16 %v909_v23, %v909_v23  ;;  %v1607_v10 = vld [vmem:[%s8497_s1 + $0x2f8] sm:$0xff] }
 0x185   :  { %5930 = vmatprep.subr.bf16.mxu0 %v7045_v32  ;;  %3730 = vmatprep.subr.bf16.mxu1 %v6935_v33  ;;  %v434_v32 = vcombine.high %v34_v18, %v34_v18  ;;  %v7053_v33 = vcombine.high %v1604_v26, %v1604_v26  ;;  %v6943_v34 = vcombine.high %v1549_v27, %v1549_v27 }
 0x187   :  { %v448_v36 = vrot.slane %v434_v32, %v7887_v20 }
 0x189   :  { %v450_v38 = vcombine.high %v448_v36, %v448_v36 }
 0x18e   :  { %3723 = vmatmul.mubr.bf16.vlgmr.msra.gmra.mrb[0].mxu1 %v1355_v39  ;;  %5923 = vmatmul.mubr.bf16.vlgmr.msra.gmra.mrb[0].mxu0 %v1465_v40  ;;  %v925_v39 = vcombine.high %v917_v37, %v917_v37  ;;  %v1363_v40 = vpack.c.bf16 %v441_v19, %v441_v19  ;;  %v36_v19 = vld [vmem:[%s8496_s0 + $0xa0] sm:$0xff] }
 0x18f   :  { %5931 = vmatpush1.bf16.xpose.msra.mxu0 %v7044_v43  ;;  %3731 = vmatpush1.bf16.xpose.msra.mxu1 %v6934_v44  ;;  %v1550_v43 = vld [vmem:[%s8497_s1 + $0x130] sm:$0xff]  ;;  %v7052_v44 = vcombine.low %v1604_v26, %v1604_v26  ;;  %v475_v21 = vrot.slane %v36_v19, %v7887_v20  ;;  %v1479_v26 = vpack.c.bf16 %v934_v5, %v934_v5 }
 0x190   :  { %3762 = vmatprep.mubr.bf16.mxu1 %v1358_v45  ;;  %5962 = vmatprep.mubr.bf16.mxu0 %v1468_v46  ;;  %v6942_v45 = vcombine.low %v1549_v27, %v1549_v27  ;;  %v1366_v46 = vpack.c.bf16 %v450_v38, %v450_v38  ;;  %v1476_v47 = vpack.c.bf16 %v925_v39, %v925_v39  ;;  %v1608_v27 = vld [vmem:[%s8497_s1 + $0x300] sm:$0xff] }
 0x191   :  { %5970 = vmatprep.subr.bf16.mxu0 %v7047_v48  ;;  %3770 = vmatprep.subr.bf16.mxu1 %v6937_v49  ;;  %v910_v48 = vcombine.high %v62_v35, %v62_v35  ;;  %v7055_v49 = vcombine.high %v1605_v42, %v1605_v42  ;;  %v6945_v50 = vcombine.high %v1550_v43, %v1550_v43 }
 0x192   :  { %v483_v23 = vcombine.high %v475_v21, %v475_v21 }
 0x193   :  { %v924_v53 = vrot.slane %v910_v48, %v7887_v20 }
 0x195   :  { %v1477_v9 = vpack.c.bf16 %v924_v53, %v924_v53 }
 0x19a   :  { %3763 = vmatmul.mubr.bf16.vlgmr.msra.gmra.mrb[0].mxu1 %v1357_v55  ;;  %5963 = vmatmul.mubr.bf16.vlgmr.msra.gmra.mrb[0].mxu0 %v1467_v56  ;;  %v926_v55 = vcombine.high %v924_v53, %v924_v53  ;;  %v1365_v56 = vpack.c.bf16 %v448_v36, %v448_v36  ;;  %v64_v36 = vld [vmem:[%s8496_s0 + $0x180] sm:$0xff] }
 0x19b   :  { %5971 = vmatpush1.bf16.xpose.msra.mxu0 %v7046_v59  ;;  %3771 = vmatpush1.bf16.xpose.msra.mxu1 %v6936_v60  ;;  %v1551_v59 = vld [vmem:[%s8497_s1 + $0x138] sm:$0xff]  ;;  %v7054_v60 = vcombine.low %v1605_v42, %v1605_v42  ;;  %v951_v38 = vrot.slane %v64_v36, %v7887_v20 }
 0x19c   :  { %3802 = vmatprep.mubr.bf16.mxu1 %v1360_v61  ;;  %6002 = vmatprep.mubr.bf16.mxu0 %v1470_v62  ;;  %v6944_v61 = vcombine.low %v1550_v43, %v1550_v43  ;;  %v1368_v62 = vpack.c.bf16 %v466_v54, %v466_v54  ;;  %v1478_v63 = vpack.c.bf16 %v926_v55, %v926_v55  ;;  %v1609_v43 = vld [vmem:[%s8497_s1 + $0x308] sm:$0xff] }
 0x19d   :  { %6010 = vmatprep.subr.bf16.mxu0 %v7049_v0  ;;  %3810 = vmatprep.subr.bf16.mxu1 %v6939_v1  ;;  %v451_v0 = vcombine.high %v35_v51, %v35_v51  ;;  %v7057_v1 = vcombine.high %v1606_v58, %v1606_v58  ;;  %v6947_v2 = vcombine.high %v1551_v59, %v1551_v59 }
 0x19f   :  { %v465_v4 = vrot.slane %v451_v0, %v7887_v20 }
 0x1a1   :  { %v467_v6 = vcombine.high %v465_v4, %v465_v4 }
 0x1a6   :  { %3803 = vmatmul.mubr.bf16.vlgmr.msra.gmra.mrb[0].mxu1 %v1359_v7  ;;  %6003 = vmatmul.mubr.bf16.vlgmr.msra.gmra.mrb[0].mxu0 %v1469_v8  ;;  %v942_v7 = vcombine.high %v934_v5, %v934_v5  ;;  %v1367_v8 = vpack.c.bf16 %v458_v52, %v458_v52  ;;  %v37_v52 = vld [vmem:[%s8496_s0 + $0xa8] sm:$0xff] }
 0x1a7   :  { %6011 = vmatpush1.bf16.xpose.msra.mxu0 %v7048_v11  ;;  %3811 = vmatpush1.bf16.xpose.msra.mxu1 %v6938_v12  ;;  %v1552_v11 = vld [vmem:[%s8497_s1 + $0x140] sm:$0xff]  ;;  %v7056_v12 = vcombine.low %v1606_v58, %v1606_v58  ;;  %v492_v53 = vrot.slane %v37_v52, %v7887_v20  ;;  %v1483_v58 = vpack.c.bf16 %v951_v38, %v951_v38 }
 0x1a8   :  { %3842 = vmatprep.mubr.bf16.mxu1 %v1362_v13  ;;  %6042 = vmatprep.mubr.bf16.mxu0 %v1472_v14  ;;  %v6946_v13 = vcombine.low %v1551_v59, %v1551_v59  ;;  %v1370_v14 = vpack.c.bf16 %v467_v6, %v467_v6  ;;  %v1480_v15 = vpack.c.bf16 %v942_v7, %v942_v7  ;;  %v1610_v59 = vld [vmem:[%s8497_s1 + $0x310] sm:$0xff] }
 0x1a9   :  { %6050 = vmatprep.subr.bf16.mxu0 %v7051_v16  ;;  %3850 = vmatprep.subr.bf16.mxu1 %v6941_v17  ;;  %v927_v16 = vcombine.high %v63_v3, %v63_v3  ;;  %v7059_v17 = vcombine.high %v1607_v10, %v1607_v10  ;;  %v6949_v18 = vcombine.high %v1552_v11, %v1552_v11 }
 0x1aa   :  { %v500_v55 = vcombine.high %v492_v53, %v492_v53 }
 0x1ab   :  { %v941_v22 = vrot.slane %v927_v16, %v7887_v20 }
 0x1ad   :  { %v1481_v42 = vpack.c.bf16 %v941_v22, %v941_v22 }
 0x1b2   :  { %3843 = vmatmul.mubr.bf16.vlgmr.msra.gmra.mrb[0].mxu1 %v1361_v24  ;;  %6043 = vmatmul.mubr.bf16.vlgmr.msra.gmra.mrb[0].mxu0 %v1471_v25  ;;  %v943_v24 = vcombine.high %v941_v22, %v941_v22  ;;  %v1369_v25 = vpack.c.bf16 %v465_v4, %v465_v4  ;;  %v65_v4 = vld [vmem:[%s8496_s0 + $0x188] sm:$0xff] }
 0x1b3   :  { %6051 = vmatpush1.bf16.xpose.msra.mxu0 %v7050_v28  ;;  %3851 = vmatpush1.bf16.xpose.msra.mxu1 %v6940_v29  ;;  %v1553_v28 = vld [vmem:[%s8497_s1 + $0x148] sm:$0xff]  ;;  %v7058_v29 = vcombine.low %v1607_v10, %v1607_v10  ;;  %v968_v6 = vrot.slane %v65_v4, %v7887_v20 }
 0x1b4   :  { %3882 = vmatprep.mubr.bf16.mxu1 %v1364_v30  ;;  %6082 = vmatprep.mubr.bf16.mxu0 %v1474_v31  ;;  %v6948_v30 = vcombine.low %v1552_v11, %v1552_v11  ;;  %v1372_v31 = vpack.c.bf16 %v483_v23, %v483_v23  ;;  %v1482_v32 = vpack.c.bf16 %v943_v24, %v943_v24  ;;  %v1611_v11 = vld [vmem:[%s8497_s1 + $0x318] sm:$0xff] }
 0x1b5   :  { %6090 = vmatprep.subr.bf16.mxu0 %v7053_v33  ;;  %3890 = vmatprep.subr.bf16.mxu1 %v6943_v34  ;;  %v468_v33 = vcombine.high %v36_v19, %v36_v19  ;;  %v7061_v34 = vcombine.high %v1608_v27, %v1608_v27  ;;  %v6951_v35 = vcombine.high %v1553_v28, %v1553_v28 }
 0x1b7   :  { %v482_v37 = vrot.slane %v468_v33, %v7887_v20 }
 0x1b9   :  { %v484_v39 = vcombine.high %v482_v37, %v482_v37 }
 0x1be   :  { %3883 = vmatmul.mubr.bf16.vlgmr.msra.gmra.mrb[0].mxu1 %v1363_v40  ;;  %6083 = vmatmul.mubr.bf16.vlgmr.msra.gmra.mrb[0].mxu0 %v1473_v41  ;;  %v959_v40 = vcombine.high %v951_v38, %v951_v38  ;;  %v1371_v41 = vpack.c.bf16 %v475_v21, %v475_v21  ;;  %v38_v21 = vld [vmem:[%s8496_s0 + $0xb0] sm:$0xff] }
 0x1bf   :  { %6091 = vmatpush1.bf16.xpose.msra.mxu0 %v7052_v44  ;;  %3891 = vmatpush1.bf16.xpose.msra.mxu1 %v6942_v45  ;;  %v1554_v44 = vld [vmem:[%s8497_s1 + $0x150] sm:$0xff]  ;;  %v7060_v45 = vcombine.low %v1608_v27, %v1608_v27  ;;  %v509_v22 = vrot.slane %v38_v21, %v7887_v20  ;;  %v1487_v27 = vpack.c.bf16 %v968_v6, %v968_v6 }
 0x1c0   :  { %3922 = vmatprep.mubr.bf16.mxu1 %v1366_v46  ;;  %6122 = vmatprep.mubr.bf16.mxu0 %v1476_v47  ;;  %v6950_v46 = vcombine.low %v1553_v28, %v1553_v28  ;;  %v1374_v47 = vpack.c.bf16 %v484_v39, %v484_v39  ;;  %v1484_v48 = vpack.c.bf16 %v959_v40, %v959_v40  ;;  %v1612_v28 = vld [vmem:[%s8497_s1 + $0x320] sm:$0xff] }
 0x1c1   :  { %6130 = vmatprep.subr.bf16.mxu0 %v7055_v49  ;;  %3930 = vmatprep.subr.bf16.mxu1 %v6945_v50  ;;  %v944_v49 = vcombine.high %v64_v36, %v64_v36  ;;  %v7063_v50 = vcombine.high %v1609_v43, %v1609_v43  ;;  %v6953_v51 = vcombine.high %v1554_v44, %v1554_v44 }
 0x1c2   :  { %v517_v24 = vcombine.high %v509_v22, %v509_v22 }
 0x1c3   :  { %v958_v54 = vrot.slane %v944_v49, %v7887_v20 }
 0x1c5   :  { %v1485_v10 = vpack.c.bf16 %v958_v54, %v958_v54 }
 0x1ca   :  { %3923 = vmatmul.mubr.bf16.vlgmr.msra.gmra.mrb[0].mxu1 %v1365_v56  ;;  %6123 = vmatmul.mubr.bf16.vlgmr.msra.gmra.mrb[0].mxu0 %v1475_v57  ;;  %v960_v56 = vcombine.high %v958_v54, %v958_v54  ;;  %v1373_v57 = vpack.c.bf16 %v482_v37, %v482_v37  ;;  %v66_v37 = vld [vmem:[%s8496_s0 + $0x190] sm:$0xff] }
 0x1cb   :  { %6131 = vmatpush1.bf16.xpose.msra.mxu0 %v7054_v60  ;;  %3931 = vmatpush1.bf16.xpose.msra.mxu1 %v6944_v61  ;;  %v1555_v60 = vld [vmem:[%s8497_s1 + $0x158] sm:$0xff]  ;;  %v7062_v61 = vcombine.low %v1609_v43, %v1609_v43  ;;  %v985_v39 = vrot.slane %v66_v37, %v7887_v20 }
 0x1cc   :  { %3962 = vmatprep.mubr.bf16.mxu1 %v1368_v62  ;;  %6162 = vmatprep.mubr.bf16.mxu0 %v1478_v63  ;;  %v6952_v62 = vcombine.low %v1554_v44, %v1554_v44  ;;  %v1376_v63 = vpack.c.bf16 %v500_v55, %v500_v55  ;;  %v1486_v0 = vpack.c.bf16 %v960_v56, %v960_v56  ;;  %v1613_v44 = vld [vmem:[%s8497_s1 + $0x328] sm:$0xff] }
 0x1cd   :  { %6170 = vmatprep.subr.bf16.mxu0 %v7057_v1  ;;  %3970 = vmatprep.subr.bf16.mxu1 %v6947_v2  ;;  %v485_v1 = vcombine.high %v37_v52, %v37_v52  ;;  %v7065_v2 = vcombine.high %v1610_v59, %v1610_v59  ;;  %v6955_v3 = vcombine.high %v1555_v60, %v1555_v60 }
 0x1cf   :  { %v499_v5 = vrot.slane %v485_v1, %v7887_v20 }
 0x1d1   :  { %v501_v7 = vcombine.high %v499_v5, %v499_v5 }
 0x1d6   :  { %3963 = vmatmul.mubr.bf16.vlgmr.msra.gmra.mrb[0].mxu1 %v1367_v8  ;;  %6163 = vmatmul.mubr.bf16.vlgmr.msra.gmra.mrb[0].mxu0 %v1477_v9  ;;  %v976_v8 = vcombine.high %v968_v6, %v968_v6  ;;  %v1375_v9 = vpack.c.bf16 %v492_v53, %v492_v53  ;;  %v39_v53 = vld [vmem:[%s8496_s0 + $0xb8] sm:$0xff] }
 0x1d7   :  { %6171 = vmatpush1.bf16.xpose.msra.mxu0 %v7056_v12  ;;  %3971 = vmatpush1.bf16.xpose.msra.mxu1 %v6946_v13  ;;  %v1556_v12 = vld [vmem:[%s8497_s1 + $0x160] sm:$0xff]  ;;  %v7064_v13 = vcombine.low %v1610_v59, %v1610_v59  ;;  %v526_v54 = vrot.slane %v39_v53, %v7887_v20  ;;  %v1491_v59 = vpack.c.bf16 %v985_v39, %v985_v39 }
 0x1d8   :  { %4002 = vmatprep.mubr.bf16.mxu1 %v1370_v14  ;;  %6202 = vmatprep.mubr.bf16.mxu0 %v1480_v15  ;;  %v6954_v14 = vcombine.low %v1555_v60, %v1555_v60  ;;  %v1378_v15 = vpack.c.bf16 %v501_v7, %v501_v7  ;;  %v1488_v16 = vpack.c.bf16 %v976_v8, %v976_v8  ;;  %v1614_v60 = vld [vmem:[%s8497_s1 + $0x330] sm:$0xff] }
 0x1d9   :  { %6210 = vmatprep.subr.bf16.mxu0 %v7059_v17  ;;  %4010 = vmatprep.subr.bf16.mxu1 %v6949_v18  ;;  %v961_v17 = vcombine.high %v65_v4, %v65_v4  ;;  %v7067_v18 = vcombine.high %v1611_v11, %v1611_v11  ;;  %v6957_v19 = vcombine.high %v1556_v12, %v1556_v12 }
 0x1da   :  { %v534_v56 = vcombine.high %v526_v54, %v526_v54 }
 0x1db   :  { %v975_v23 = vrot.slane %v961_v17, %v7887_v20 }
 0x1dd   :  { %v1489_v43 = vpack.c.bf16 %v975_v23, %v975_v23 }
 0x1e2   :  { %4003 = vmatmul.mubr.bf16.vlgmr.msra.gmra.mrb[0].mxu1 %v1369_v25  ;;  %6203 = vmatmul.mubr.bf16.vlgmr.msra.gmra.mrb[0].mxu0 %v1479_v26  ;;  %v977_v25 = vcombine.high %v975_v23, %v975_v23  ;;  %v1377_v26 = vpack.c.bf16 %v499_v5, %v499_v5  ;;  %v67_v5 = vld [vmem:[%s8496_s0 + $0x198] sm:$0xff] }
 0x1e3   :  { %6211 = vmatpush1.bf16.xpose.msra.mxu0 %v7058_v29  ;;  %4011 = vmatpush1.bf16.xpose.msra.mxu1 %v6948_v30  ;;  %v1557_v29 = vld [vmem:[%s8497_s1 + $0x168] sm:$0xff]  ;;  %v7066_v30 = vcombine.low %v1611_v11, %v1611_v11  ;;  %v1002_v7 = vrot.slane %v67_v5, %v7887_v20 }
 0x1e4   :  { %4042 = vmatprep.mubr.bf16.mxu1 %v1372_v31  ;;  %6242 = vmatprep.mubr.bf16.mxu0 %v1482_v32  ;;  %v6956_v31 = vcombine.low %v1556_v12, %v1556_v12  ;;  %v1380_v32 = vpack.c.bf16 %v517_v24, %v517_v24  ;;  %v1490_v33 = vpack.c.bf16 %v977_v25, %v977_v25  ;;  %v1615_v12 = vld [vmem:[%s8497_s1 + $0x338] sm:$0xff] }
 0x1e5   :  { %6250 = vmatprep.subr.bf16.mxu0 %v7061_v34  ;;  %4050 = vmatprep.subr.bf16.mxu1 %v6951_v35  ;;  %v502_v34 = vcombine.high %v38_v21, %v38_v21  ;;  %v7069_v35 = vcombine.high %v1612_v28, %v1612_v28  ;;  %v6959_v36 = vcombine.high %v1557_v29, %v1557_v29 }
 0x1e7   :  { %v516_v38 = vrot.slane %v502_v34, %v7887_v20 }
 0x1e9   :  { %v518_v40 = vcombine.high %v516_v38, %v516_v38 }
 0x1ee   :  { %4043 = vmatmul.mubr.bf16.vlgmr.msra.gmra.mrb[0].mxu1 %v1371_v41  ;;  %6243 = vmatmul.mubr.bf16.vlgmr.msra.gmra.mrb[0].mxu0 %v1481_v42  ;;  %v993_v41 = vcombine.high %v985_v39, %v985_v39  ;;  %v1379_v42 = vpack.c.bf16 %v509_v22, %v509_v22  ;;  %v40_v22 = vld [vmem:[%s8496_s0 + $0xc0] sm:$0xff] }
 0x1ef   :  { %6251 = vmatpush1.bf16.xpose.msra.mxu0 %v7060_v45  ;;  %4051 = vmatpush1.bf16.xpose.msra.mxu1 %v6950_v46  ;;  %v1558_v45 = vld [vmem:[%s8497_s1 + $0x170] sm:$0xff]  ;;  %v7068_v46 = vcombine.low %v1612_v28, %v1612_v28  ;;  %v543_v23 = vrot.slane %v40_v22, %v7887_v20  ;;  %v1495_v28 = vpack.c.bf16 %v1002_v7, %v1002_v7 }
 0x1f0   :  { %4082 = vmatprep.mubr.bf16.mxu1 %v1374_v47  ;;  %6282 = vmatprep.mubr.bf16.mxu0 %v1484_v48  ;;  %v6958_v47 = vcombine.low %v1557_v29, %v1557_v29  ;;  %v1382_v48 = vpack.c.bf16 %v518_v40, %v518_v40  ;;  %v1492_v49 = vpack.c.bf16 %v993_v41, %v993_v41  ;;  %v1616_v29 = vld [vmem:[%s8497_s1 + $0x340] sm:$0xff] }
 0x1f1   :  { %6290 = vmatprep.subr.bf16.mxu0 %v7063_v50  ;;  %4090 = vmatprep.subr.bf16.mxu1 %v6953_v51  ;;  %v978_v50 = vcombine.high %v66_v37, %v66_v37  ;;  %v7071_v51 = vcombine.high %v1613_v44, %v1613_v44  ;;  %v6961_v52 = vcombine.high %v1558_v45, %v1558_v45 }
 0x1f2   :  { %v551_v25 = vcombine.high %v543_v23, %v543_v23 }
 0x1f3   :  { %v992_v55 = vrot.slane %v978_v50, %v7887_v20 }
 0x1f5   :  { %v1493_v11 = vpack.c.bf16 %v992_v55, %v992_v55 }
 0x1fa   :  { %4083 = vmatmul.mubr.bf16.vlgmr.msra.gmra.mrb[0].mxu1 %v1373_v57  ;;  %6283 = vmatmul.mubr.bf16.vlgmr.msra.gmra.mrb[0].mxu0 %v1483_v58  ;;  %v994_v57 = vcombine.high %v992_v55, %v992_v55  ;;  %v1381_v58 = vpack.c.bf16 %v516_v38, %v516_v38  ;;  %v68_v38 = vld [vmem:[%s8496_s0 + $0x1a0] sm:$0xff] }
 0x1fb   :  { %6291 = vmatpush1.bf16.xpose.msra.mxu0 %v7062_v61  ;;  %4091 = vmatpush1.bf16.xpose.msra.mxu1 %v6952_v62  ;;  %v1559_v61 = vld [vmem:[%s8497_s1 + $0x178] sm:$0xff]  ;;  %v7070_v62 = vcombine.low %v1613_v44, %v1613_v44  ;;  %v1019_v40 = vrot.slane %v68_v38, %v7887_v20 }
 0x1fc   :  { %4122 = vmatprep.mubr.bf16.mxu1 %v1376_v63  ;;  %6322 = vmatprep.mubr.bf16.mxu0 %v1486_v0  ;;  %v6960_v63 = vcombine.low %v1558_v45, %v1558_v45  ;;  %v1384_v0 = vpack.c.bf16 %v534_v56, %v534_v56  ;;  %v1494_v1 = vpack.c.bf16 %v994_v57, %v994_v57  ;;  %v1617_v45 = vld [vmem:[%s8497_s1 + $0x348] sm:$0xff] }
 0x1fd   :  { %6330 = vmatprep.subr.bf16.mxu0 %v7065_v2  ;;  %4130 = vmatprep.subr.bf16.mxu1 %v6955_v3  ;;  %v519_v2 = vcombine.high %v39_v53, %v39_v53  ;;  %v7073_v3 = vcombine.high %v1614_v60, %v1614_v60  ;;  %v6963_v4 = vcombine.high %v1559_v61, %v1559_v61 }
 0x1ff   :  { %v533_v6 = vrot.slane %v519_v2, %v7887_v20 }
 0x201   :  { %v535_v8 = vcombine.high %v533_v6, %v533_v6 }
 0x206   :  { %4123 = vmatmul.mubr.bf16.vlgmr.msra.gmra.mrb[0].mxu1 %v1375_v9  ;;  %6323 = vmatmul.mubr.bf16.vlgmr.msra.gmra.mrb[0].mxu0 %v1485_v10  ;;  %v1010_v9 = vcombine.high %v1002_v7, %v1002_v7  ;;  %v1383_v10 = vpack.c.bf16 %v526_v54, %v526_v54  ;;  %v41_v54 = vld [vmem:[%s8496_s0 + $0xc8] sm:$0xff] }
 0x207   :  { %6331 = vmatpush1.bf16.xpose.msra.mxu0 %v7064_v13  ;;  %4131 = vmatpush1.bf16.xpose.msra.mxu1 %v6954_v14  ;;  %v1560_v13 = vld [vmem:[%s8497_s1 + $0x180] sm:$0xff]  ;;  %v7072_v14 = vcombine.low %v1614_v60, %v1614_v60  ;;  %v560_v55 = vrot.slane %v41_v54, %v7887_v20  ;;  %v1499_v60 = vpack.c.bf16 %v1019_v40, %v1019_v40 }
 0x208   :  { %4162 = vmatprep.mubr.bf16.mxu1 %v1378_v15  ;;  %6362 = vmatprep.mubr.bf16.mxu0 %v1488_v16  ;;  %v6962_v15 = vcombine.low %v1559_v61, %v1559_v61  ;;  %v1386_v16 = vpack.c.bf16 %v535_v8, %v535_v8  ;;  %v1496_v17 = vpack.c.bf16 %v1010_v9, %v1010_v9  ;;  %v1618_v61 = vld [vmem:[%s8497_s1 + $0x350] sm:$0xff] }
 0x209   :  { %6370 = vmatprep.subr.bf16.mxu0 %v7067_v18  ;;  %4170 = vmatprep.subr.bf16.mxu1 %v6957_v19  ;;  %v995_v18 = vcombine.high %v67_v5, %v67_v5  ;;  %v7075_v19 = vcombine.high %v1615_v12, %v1615_v12  ;;  %v6965_v21 = vcombine.high %v1560_v13, %v1560_v13 }
 0x20a   :  { %v568_v57 = vcombine.high %v560_v55, %v560_v55 }
 0x20b   :  { %v1009_v24 = vrot.slane %v995_v18, %v7887_v20 }
 0x20d   :  { %v1497_v44 = vpack.c.bf16 %v1009_v24, %v1009_v24 }
 0x212   :  { %4163 = vmatmul.mubr.bf16.vlgmr.msra.gmra.mrb[0].mxu1 %v1377_v26  ;;  %6363 = vmatmul.mubr.bf16.vlgmr.msra.gmra.mrb[0].mxu0 %v1487_v27  ;;  %v1011_v26 = vcombine.high %v1009_v24, %v1009_v24  ;;  %v1385_v27 = vpack.c.bf16 %v533_v6, %v533_v6  ;;  %v69_v6 = vld [vmem:[%s8496_s0 + $0x1a8] sm:$0xff] }
 0x213   :  { %6371 = vmatpush1.bf16.xpose.msra.mxu0 %v7066_v30  ;;  %4171 = vmatpush1.bf16.xpose.msra.mxu1 %v6956_v31  ;;  %v1561_v30 = vld [vmem:[%s8497_s1 + $0x188] sm:$0xff]  ;;  %v7074_v31 = vcombine.low %v1615_v12, %v1615_v12  ;;  %v1036_v8 = vrot.slane %v69_v6, %v7887_v20 }
 0x214   :  { %4202 = vmatprep.mubr.bf16.mxu1 %v1380_v32  ;;  %6402 = vmatprep.mubr.bf16.mxu0 %v1490_v33  ;;  %v6964_v32 = vcombine.low %v1560_v13, %v1560_v13  ;;  %v1388_v33 = vpack.c.bf16 %v551_v25, %v551_v25  ;;  %v1498_v34 = vpack.c.bf16 %v1011_v26, %v1011_v26  ;;  %v1619_v13 = vld [vmem:[%s8497_s1 + $0x358] sm:$0xff] }
 0x215   :  { %6410 = vmatprep.subr.bf16.mxu0 %v7069_v35  ;;  %4210 = vmatprep.subr.bf16.mxu1 %v6959_v36  ;;  %v536_v35 = vcombine.high %v40_v22, %v40_v22  ;;  %v7077_v36 = vcombine.high %v1616_v29, %v1616_v29  ;;  %v6967_v37 = vcombine.high %v1561_v30, %v1561_v30 }
 0x217   :  { %v550_v39 = vrot.slane %v536_v35, %v7887_v20 }
 0x219   :  { %v552_v41 = vcombine.high %v550_v39, %v550_v39 }
 0x21e   :  { %4203 = vmatmul.mubr.bf16.vlgmr.msra.gmra.mrb[0].mxu1 %v1379_v42  ;;  %6403 = vmatmul.mubr.bf16.vlgmr.msra.gmra.mrb[0].mxu0 %v1489_v43  ;;  %v1027_v42 = vcombine.high %v1019_v40, %v1019_v40  ;;  %v1387_v43 = vpack.c.bf16 %v543_v23, %v543_v23  ;;  %v42_v23 = vld [vmem:[%s8496_s0 + $0xd0] sm:$0xff] }
 0x21f   :  { %6411 = vmatpush1.bf16.xpose.msra.mxu0 %v7068_v46  ;;  %4211 = vmatpush1.bf16.xpose.msra.mxu1 %v6958_v47  ;;  %v1562_v46 = vld [vmem:[%s8497_s1 + $0x190] sm:$0xff]  ;;  %v7076_v47 = vcombine.low %v1616_v29, %v1616_v29  ;;  %v577_v24 = vrot.slane %v42_v23, %v7887_v20  ;;  %v1503_v29 = vpack.c.bf16 %v1036_v8, %v1036_v8 }
 0x220   :  { %4242 = vmatprep.mubr.bf16.mxu1 %v1382_v48  ;;  %6442 = vmatprep.mubr.bf16.mxu0 %v1492_v49  ;;  %v6966_v48 = vcombine.low %v1561_v30, %v1561_v30  ;;  %v1390_v49 = vpack.c.bf16 %v552_v41, %v552_v41  ;;  %v1500_v50 = vpack.c.bf16 %v1027_v42, %v1027_v42  ;;  %v1620_v30 = vld [vmem:[%s8497_s1 + $0x360] sm:$0xff] }
 0x221   :  { %6450 = vmatprep.subr.bf16.mxu0 %v7071_v51  ;;  %4250 = vmatprep.subr.bf16.mxu1 %v6961_v52  ;;  %v1012_v51 = vcombine.high %v68_v38, %v68_v38  ;;  %v7079_v52 = vcombine.high %v1617_v45, %v1617_v45  ;;  %v6969_v53 = vcombine.high %v1562_v46, %v1562_v46 }
 0x222   :  { %v585_v26 = vcombine.high %v577_v24, %v577_v24 }
 0x223   :  { %v1026_v56 = vrot.slane %v1012_v51, %v7887_v20 }
 0x225   :  { %v1501_v12 = vpack.c.bf16 %v1026_v56, %v1026_v56 }
 0x22a   :  { %4243 = vmatmul.mubr.bf16.vlgmr.msra.gmra.mrb[0].mxu1 %v1381_v58  ;;  %6443 = vmatmul.mubr.bf16.vlgmr.msra.gmra.mrb[0].mxu0 %v1491_v59  ;;  %v1028_v58 = vcombine.high %v1026_v56, %v1026_v56  ;;  %v1389_v59 = vpack.c.bf16 %v550_v39, %v550_v39  ;;  %v70_v39 = vld [vmem:[%s8496_s0 + $0x1b0] sm:$0xff] }
 0x22b   :  { %6451 = vmatpush1.bf16.xpose.msra.mxu0 %v7070_v62  ;;  %4251 = vmatpush1.bf16.xpose.msra.mxu1 %v6960_v63  ;;  %v1563_v62 = vld [vmem:[%s8497_s1 + $0x198] sm:$0xff]  ;;  %v7078_v63 = vcombine.low %v1617_v45, %v1617_v45  ;;  %v1053_v41 = vrot.slane %v70_v39, %v7887_v20 }
 0x22c   :  { %4282 = vmatprep.mubr.bf16.mxu1 %v1384_v0  ;;  %6482 = vmatprep.mubr.bf16.mxu0 %v1494_v1  ;;  %v6968_v0 = vcombine.low %v1562_v46, %v1562_v46  ;;  %v1392_v1 = vpack.c.bf16 %v568_v57, %v568_v57  ;;  %v1502_v2 = vpack.c.bf16 %v1028_v58, %v1028_v58  ;;  %v1621_v46 = vld [vmem:[%s8497_s1 + $0x368] sm:$0xff] }
 0x22d   :  { %6490 = vmatprep.subr.bf16.mxu0 %v7073_v3  ;;  %4290 = vmatprep.subr.bf16.mxu1 %v6963_v4  ;;  %v553_v3 = vcombine.high %v41_v54, %v41_v54  ;;  %v7081_v4 = vcombine.high %v1618_v61, %v1618_v61  ;;  %v6971_v5 = vcombine.high %v1563_v62, %v1563_v62 }
 0x22f   :  { %v567_v7 = vrot.slane %v553_v3, %v7887_v20 }
 0x231   :  { %v569_v9 = vcombine.high %v567_v7, %v567_v7 }
 0x236   :  { %4283 = vmatmul.mubr.bf16.vlgmr.msra.gmra.mrb[0].mxu1 %v1383_v10  ;;  %6483 = vmatmul.mubr.bf16.vlgmr.msra.gmra.mrb[0].mxu0 %v1493_v11  ;;  %v1044_v10 = vcombine.high %v1036_v8, %v1036_v8  ;;  %v1391_v11 = vpack.c.bf16 %v560_v55, %v560_v55  ;;  %v7817_v55 = vld.sshfl [vmem:[%s8496_s0 + $0xd8] sm:$0xff pattern:$0x76325410] }
 0x237   :  { %6491 = vmatpush1.bf16.xpose.msra.mxu0 %v7072_v14  ;;  %4291 = vmatpush1.bf16.xpose.msra.mxu1 %v6962_v15  ;;  %v1564_v14 = vld [vmem:[%s8497_s1 + $0x1a0] sm:$0xff]  ;;  %v7080_v15 = vcombine.low %v1618_v61, %v1618_v61  ;;  %v602_v57 = vcombine.high %v7817_v55, %v7817_v55  ;;  %v7086_v61 = vcombine.low %v1621_v46, %v1621_v46 }
 0x238   :  { %4322 = vmatprep.mubr.bf16.mxu1 %v1386_v16  ;;  %6522 = vmatprep.mubr.bf16.mxu0 %v1496_v17  ;;  %v6970_v16 = vcombine.low %v1563_v62, %v1563_v62  ;;  %v1394_v17 = vpack.c.bf16 %v569_v9, %v569_v9  ;;  %v1504_v18 = vpack.c.bf16 %v1044_v10, %v1044_v10 }
 0x239   :  { %6530 = vmatprep.subr.bf16.mxu0 %v7075_v19  ;;  %4330 = vmatprep.subr.bf16.mxu1 %v6965_v21  ;;  %v1029_v19 = vcombine.high %v69_v6, %v69_v6  ;;  %v7083_v21 = vcombine.high %v1619_v13, %v1619_v13  ;;  %v6973_v22 = vcombine.high %v1564_v14, %v1564_v14 }
 0x23b   :  { %v1043_v25 = vrot.slane %v1029_v19, %v7887_v20 }
 0x23d   :  { %v1505_v45 = vpack.c.bf16 %v1043_v25, %v1043_v25 }
 0x242   :  { %4323 = vmatmul.mubr.bf16.vlgmr.msra.gmra.mrb[0].mxu1 %v1385_v27  ;;  %6523 = vmatmul.mubr.bf16.vlgmr.msra.gmra.mrb[0].mxu0 %v1495_v28  ;;  %v1045_v27 = vcombine.high %v1043_v25, %v1043_v25  ;;  %v1393_v28 = vpack.c.bf16 %v567_v7, %v567_v7 }
 0x243   :  { %6531 = vmatpush1.bf16.xpose.msra.mxu0 %v7074_v31  ;;  %4331 = vmatpush1.bf16.xpose.msra.mxu1 %v6964_v32  ;;  %v1565_v31 = vld [vmem:[%s8497_s1 + $0x1a8] sm:$0xff]  ;;  %v7082_v32 = vcombine.low %v1619_v13, %v1619_v13 }
 0x244   :  { %4362 = vmatprep.mubr.bf16.mxu1 %v1388_v33  ;;  %6562 = vmatprep.mubr.bf16.mxu0 %v1498_v34  ;;  %v6972_v33 = vcombine.low %v1564_v14, %v1564_v14  ;;  %v1396_v34 = vpack.c.bf16 %v585_v26, %v585_v26  ;;  %v1506_v35 = vpack.c.bf16 %v1045_v27, %v1045_v27 }
 0x245   :  { %6570 = vmatprep.subr.bf16.mxu0 %v7077_v36  ;;  %4370 = vmatprep.subr.bf16.mxu1 %v6967_v37  ;;  %v570_v36 = vcombine.high %v42_v23, %v42_v23  ;;  %v7085_v37 = vcombine.high %v1620_v30, %v1620_v30  ;;  %v6975_v38 = vcombine.high %v1565_v31, %v1565_v31 }
 0x247   :  { %v584_v40 = vrot.slane %v570_v36, %v7887_v20 }
 0x249   :  { %v586_v42 = vcombine.high %v584_v40, %v584_v40 }
 0x24e   :  { %4363 = vmatmul.mubr.bf16.vlgmr.msra.gmra.mrb[0].mxu1 %v1387_v43  ;;  %6563 = vmatmul.mubr.bf16.vlgmr.msra.gmra.mrb[0].mxu0 %v1497_v44  ;;  %v1061_v43 = vcombine.high %v1053_v41, %v1053_v41  ;;  %v1395_v44 = vpack.c.bf16 %v577_v24, %v577_v24 }
 0x24f   :  { %6571 = vmatpush1.bf16.xpose.msra.mxu0 %v7076_v47  ;;  %4371 = vmatpush1.bf16.xpose.msra.mxu1 %v6966_v48  ;;  %v1566_v47 = vld [vmem:[%s8497_s1 + $0x1b0] sm:$0xff]  ;;  %v7084_v48 = vcombine.low %v1620_v30, %v1620_v30 }
 0x250   :  { %4402 = vmatprep.mubr.bf16.mxu1 %v1390_v49  ;;  %6602 = vmatprep.mubr.bf16.mxu0 %v1500_v50  ;;  %v6974_v49 = vcombine.low %v1565_v31, %v1565_v31  ;;  %v1398_v50 = vpack.c.bf16 %v586_v42, %v586_v42  ;;  %v1508_v51 = vpack.c.bf16 %v1061_v43, %v1061_v43 }
 0x251   :  { %6610 = vmatprep.subr.bf16.mxu0 %v7079_v52  ;;  %4410 = vmatprep.subr.bf16.mxu1 %v6969_v53  ;;  %v1046_v52 = vcombine.high %v70_v39, %v70_v39  ;;  %v7087_v53 = vcombine.high %v1621_v46, %v1621_v46  ;;  %v6977_v54 = vcombine.high %v1566_v47, %v1566_v47 }
 0x252   :  { %v6976_v62 = vcombine.low %v1566_v47, %v1566_v47 }
 0x253   :  { %v1060_v56 = vrot.slane %v1046_v52, %v7887_v20  ;;  %v7815_v20 = vld [vmem:[%s8497_s1 + $0x370] ss:$0 sps:$4 sm:$0xff]  }
 0x255   :  { %v1062_v58 = vcombine.high %v1060_v56, %v1060_v56  ;;  %v1509_v3 = vpack.c.bf16 %v1060_v56, %v1060_v56 }
 0x25a   :  { %4403 = vmatmul.mubr.bf16.vlgmr.msra.gmra.mrb[0].mxu1 %v1389_v59  ;;  %6603 = vmatmul.mubr.bf16.vlgmr.msra.gmra.mrb[0].mxu0 %v1499_v60  ;;  %v1397_v59 = vpack.c.bf16 %v584_v40, %v584_v40  ;;  %v1507_v60 = vpack.c.bf16 %v1053_v41, %v1053_v41 }
 0x25b   :  { %6611 = vmatpush1.bf16.xpose.msra.mxu0 %v7078_v63  ;;  %4411 = vmatpush1.bf16.xpose.msra.mxu1 %v6968_v0  ;;  %v1400_v63 = vpack.c.bf16 %v602_v57, %v602_v57  ;;  %v1510_v0 = vpack.c.bf16 %v1062_v58, %v1062_v58 }
 0x25c   :  { %4442 = vmatprep.mubr.bf16.mxu1 %v1392_v1  ;;  %6642 = vmatprep.mubr.bf16.mxu0 %v1502_v2  ;;  %v7843_v1 = vmov 0.0   ;;  %v1399_v2 = vpack.c.bf16 %v7817_v55, %v7817_v55 }
 0x25d   :  { %6650 = vmatprep.subr.bf16.mxu0 %v7081_v4  ;;  %4450 = vmatprep.subr.bf16.mxu1 %v6971_v5  ;;  %v2408_v4 = vsel %vm2403_vm0, %v7815_v20, 0  ;;  %v6866_v5 = vld.sshfl [vmem:[%s8496_s0 + $0x1b8] sm:$0x3 pattern:$0x76325410]  ;;  %s7818_s0 = scalar_lea.vmem %s6859_s26, 32 }
 0x25e   :  { %v1511_v6 = vpack.c.bf16 %v6866_v5, %v6866_v5  ;;  %p7819_p0 = scmp.ne.s32.totalorder %s6859_s26, %s7818_s0  ;;  %p7824_p2 = scmp.lt.s32.totalorder %s7818_s0, %s7818_s0 }
 0x260   :  { %p7825_p3 = por %p7824_p2, %p7823_p1 }
 0x262   :  { %p7826_p4 = pnand %p7825_p3, %p7819_p0 }
 0x266   :  { %4443 = vmatmul.mubr.bf16.vlgmr.msra.gmra.mrb[0].mxu1 %v1391_v11  ;;  %6643 = vmatmul.mubr.bf16.vlgmr.msra.gmra.mrb[0].mxu0 %v1501_v12  ;;  %v6867_v11 = vld [vmem:[%s8498_s2] ss:$0 sm:$0xff] }
 0x267   :  { %6651 = vmatpush1.bf16.xpose.msra.mxu0 %v7080_v15  ;;  %4451 = vmatpush1.bf16.xpose.msra.mxu1 %v6970_v16 }
 0x268   :  { %4482 = vmatprep.mubr.bf16.mxu1 %v1394_v17  ;;  %6682 = vmatprep.mubr.bf16.mxu0 %v1504_v18 }
 0x269   :  { %6690 = vmatprep.subr.bf16.mxu0 %v7083_v21  ;;  %4490 = vmatprep.subr.bf16.mxu1 %v6973_v22 }
 0x272   :  { %4483 = vmatmul.mubr.bf16.vlgmr.msra.gmra.mrb[0].mxu1 %v1393_v28  ;;  %6683 = vmatmul.mubr.bf16.vlgmr.msra.gmra.mrb[0].mxu0 %v1503_v29 }
 0x273   :  { %6691 = vmatpush1.bf16.xpose.msra.mxu0 %v7082_v32  ;;  %4491 = vmatpush1.bf16.xpose.msra.mxu1 %v6972_v33 }
 0x274   :  { %4522 = vmatprep.mubr.bf16.mxu1 %v1396_v34  ;;  %6722 = vmatprep.mubr.bf16.mxu0 %v1506_v35 }
 0x275   :  { %6730 = vmatprep.subr.bf16.mxu0 %v7085_v37  ;;  %4530 = vmatprep.subr.bf16.mxu1 %v6975_v38 }
 0x27e   :  { %4523 = vmatmul.mubr.bf16.vlgmr.msra.gmra.mrb[0].mxu1 %v1395_v44  ;;  %6723 = vmatmul.mubr.bf16.vlgmr.msra.gmra.mrb[0].mxu0 %v1505_v45 }
 0x27f   :  { %6731 = vmatpush1.bf16.xpose.msra.mxu0 %v7084_v48  ;;  %4531 = vmatpush1.bf16.xpose.msra.mxu1 %v6974_v49 }
 0x280   :  { %4562 = vmatprep.mubr.bf16.mxu1 %v1398_v50  ;;  %6762 = vmatprep.mubr.bf16.mxu0 %v1508_v51 }
 0x281   :  { %6770 = vmatprep.subr.bf16.mxu0 %v7087_v53  ;;  %4570 = vmatprep.subr.bf16.mxu1 %v6977_v54 }
 0x28a   :  { %4563 = vmatmul.mubr.bf16.vlgmr.msra.gmra.mrb[0].mxu1 %v1397_v59  ;;  %6763 = vmatmul.mubr.bf16.vlgmr.msra.gmra.mrb[0].mxu0 %v1507_v60 }
 0x28b   :  { %6771 = vmatpush1.bf16.xpose.msra.mxu0 %v7086_v61  ;;  %4571 = vmatpush1.bf16.xpose.msra.mxu1 %v6976_v62 }
 0x28c   :  { %4602 = vmatprep.mubr.bf16.mxu1 %v1400_v63  ;;  %6802 = vmatprep.mubr.bf16.mxu0 %v1510_v0 }
 0x28d   :  { %7092 = vmatprep.subr.bf16.mxu0 %v7843_v1 }
 0x296   :  { %4603 = vmatmul.mubr.bf16.vlgmr.msra.gmra.mrb[0].mxu1 %v1399_v2  ;;  %6803 = vmatmul.mubr.bf16.vlgmr.msra.gmra.mrb[0].mxu0 %v1509_v3 }
 0x297   :  { %7093 = vmatpush3.bf16.xpose.msra.mxu0 %v2408_v4  ;;  %7094 = vmatprep.mubr.msk.bf16.mxu0 %vm7844_vm1, %v7843_v1 }
 0x2a2   :  { %7095 = vmatmul.mubr.msk.bf16.vlgmr.msra.gmra.mrb[0].mxu0 %vm2403_vm0, %v1511_v6 }
 0x369   :  { %v4604_v7 = vpop.f32.mrb[0].mxu1 }
 0x36a   :  { %v4606_v8 = vpop.f32.mrb[1].mxu1  ;;  %v7098_v12 = vadd.f32 %v6867_v11, %v4604_v7 }
 0x36b   :  { %v4607_v9 = vpop.f32.mrb[2].mxu1 }
 0x36c   :  { %v4608_v10 = vpop.f32.mrb[3].mxu1 }
 0x375   :  { %v6844_v13 = vpop.f32.mrb[0].mxu0 }
 0x376   :  { %v7099_v14 = vadd.f32 %v7098_v12, %v6844_v13  ;;  %v7096_v15 = vpop.f32.mrb[1].mxu0 }
 0x377   :  { %v6847_v16 = vpop.f32.mrb[2].mxu0 }
 0x378   :  { %v7097_v17 = vpop.f32.mrb[3].mxu0  ;;  %6851 = vst.msk [vmem:[#allocation2] sm:$0x3] %vm6850_vm2, %v7099_v14 }
 0x379   :  { %7829 = shalt.err (!%p7826_p4)
}
 0x37a   :  { %s7830_s28 = scalar_lea.hbm %s8499_s3, 32 }
 0x37b   :  { %p7831_p5 = scmp.ne.s32.totalorder %s8499_s3, %s7830_s28  ;;  %p7834_p6 = scmp.lt.u32.totalorder %s7830_s28, %s8499_s3 }
 0x37d   :  { %p7836_p7 = pnand %p7834_p6, %p7831_p5 }
 0x37f   :  { %7839 = shalt.err (!%p7836_p7)
}
 0x380   :  { %6861 = dma.vmem_to_hbm [thread:$0]  %s6859_s26, 32, %s8499_s3, [#allocation3]  }
 0x381   :  { %7840 = dma.done.wait [#allocation3], 32  }
 0x382   :  { %7841 = vsyncadd [#allocation3], 4294967264 }
 0x383   :  { %6865 = vsyncpa [#allocation3], 1 }

</bundles_post_ra>
